<compile_context>
chip_gen: v5e
topology: v5e:2x2
jax: 0.10.0
libtpu: 0.0.40
codegen_flags: <defaults>
</compile_context>

<pallas_src>
import functools

import jax
import jax.numpy as jnp
from jax.experimental import pallas as pl
from jax.experimental.pallas import tpu as pltpu

EPS = 1.1e-05   # matches nn.BatchNorm2d(eps=1.1e-05) in the PyTorch module


# ----------------------------------------------------------------------------
# Fused dense_block kernel: all conv_block layers in one call, grid=(1,).
# Channels on sublanes, flattened batch*spatial (N*H*W) on lanes.
# ----------------------------------------------------------------------------
def _dense_block_kernel(N, H, W, layer_dims, eps,
                        x_ref, masks_ref, *rest):
    """rest = (bn1p, bn2p, w1t, w2tap) per layer ..., o_ref (last)."""
    L = len(layer_dims)
    o_ref = rest[4 * L]
    NHW = N * H * W
    inv_cnt = 1.0 / float(NHW)          # BN averages over N*H*W per channel
    f32 = jnp.float32

    # Static per-tap lane shifts: tap (dy, dx) reads the input at offset
    # o = (dy-1)*W + (dx-1); roll(shift = -o) brings it onto the output lane.
    shifts = [(-((dy - 1) * W + (dx - 1))) % NHW
              for dy in range(3) for dx in range(3)]

    # Pass-through channels of the dense concat: write the input once.
    cin0 = layer_dims[0][0]
    o_ref[0:cin0, :] = x_ref[...]

    for l in range(L):
        Cin, C4, G = layer_dims[l]
        bn1_ref, bn2_ref, w1t_ref, w2_ref = rest[4 * l:4 * l + 4]
        # Concatenated features of all previous layers live in o_ref (VMEM).
        feat = x_ref[...] if l == 0 else o_ref[0:Cin, :]       # (Cin, N*HW)

        g1 = bn1_ref[0]                 # (Cin, 1) BN1 gamma folded with Scale1
        c1 = bn1_ref[1]
        g2 = bn2_ref[0]                 # (C4, 1)  BN2 gamma folded with Scale2
        c2 = bn2_ref[1]

        # ---- BN1 batch stats (single pass) + folded affine + ReLU ----------
        s1 = jnp.sum(feat, axis=1, keepdims=True)
        q1 = jnp.sum(feat * feat, axis=1, keepdims=True)
        m1 = s1 * inv_cnt
        v1 = q1 * inv_cnt - m1 * m1                            # biased var
        a1 = g1 * jax.lax.rsqrt(v1 + eps)
        b1 = c1 - m1 * a1
        z1 = jnp.maximum(feat * a1 + b1, 0.0)                  # (Cin, N*HW)

        # ---- 1x1 conv: one batched matmul over all N*HW lanes --------------
        y1 = jnp.dot(w1t_ref[...], z1,
                     preferred_element_type=f32)               # (C4, N*HW)

        # ---- BN2 batch stats + folded affine + ReLU -------------------------
        s2 = jnp.sum(y1, axis=1, keepdims=True)
        q2 = jnp.sum(y1 * y1, axis=1, keepdims=True)
        m2 = s2 * inv_cnt
        v2 = q2 * inv_cnt - m2 * m2
        a2 = g2 * jax.lax.rsqrt(v2 + eps)
        b2 = c2 - m2 * a2
        z2 = jnp.maximum(y1 * a2 + b2, 0.0)                    # (C4, N*HW)

        # ---- 3x3 conv (padding=1): 9 accumulating matmuls on rolled taps ----
        # roll uses the XLU slot, the extra matmuls the vex slot; the per-tap
        # mask zeroes taps that fall in the zero padding (and kills any wrap
        # across image rows / batch elements introduced by the lane roll).
        acc = None
        for t in range(9):
            zt = z2 if shifts[t] == 0 else pltpu.roll(z2, shifts[t], axis=1)
            if t != 4:                                         # center: no mask
                zt = zt * masks_ref[t]                         # (1, N*HW)
            contrib = jnp.dot(w2_ref[t], zt,
                              preferred_element_type=f32)      # (G, N*HW)
            acc = contrib if acc is None else acc + contrib

        # Fused channel concat: append the new features.
        o_ref[Cin:Cin + G, :] = acc


# ----------------------------------------------------------------------------
# One fused pallas_call for the whole dense block.
# ----------------------------------------------------------------------------
def _full_spec(shape):
    nd = len(shape)
    return pl.BlockSpec(shape, lambda *_, nd=nd: (0,) * nd)


def _dense_block_call(feats, masks, layers, N, H, W):
    """feats: (Cin0, N*H*W) f32 -> (Cin0 + L*G, N*H*W) f32."""
    NHW = N * H * W
    inputs = [feats, masks]
    in_specs = [_full_spec(feats.shape), _full_spec(masks.shape)]
    layer_dims = []
    cin = feats.shape[0]
    for p in layers:
        c4 = p["w1t"].shape[0]
        g = p["w2tap"].shape[1]
        layer_dims.append((cin, c4, g))
        for name in ("bn1p", "bn2p", "w1t", "w2tap"):
            inputs.append(p[name])
            in_specs.append(_full_spec(p[name].shape))
        cin += g
    c_final = cin

    kern = functools.partial(_dense_block_kernel, N, H, W,
                             tuple(layer_dims), EPS)
    # TODO(synk): at realistic DenseNet sizes, tile the N*HW lane axis (grid
    # axis + two-phase BN enabled by the sum/sum-of-squares stats) and set
    # vmem_limit_bytes explicitly; on v7x (64 MiB VMEM, 2 TCs) also split lanes
    # across cores.  At this tiny size a single-core grid=(1,) call is fastest.
    return pl.pallas_call(
        kern,
        out_shape=jax.ShapeDtypeStruct((c_final, NHW), jnp.float32),
        grid=(1,),
        in_specs=in_specs,
        out_specs=_full_spec((c_final, NHW)),
        compiler_params=pltpu.CompilerParams(
            dimension_semantics=("arbitrary",)),
    )(*inputs)


def _make_tap_masks(N, H, W):
    """(9, 1, N*H*W) f32: per-tap mask reproducing Conv2d(padding=1) zeros and
    killing row/batch wrap-around from the lane roll.  Built in XLA (outside
    the kernel) to avoid in-kernel integer div/rem on vectors."""
    HW = H * W
    idx = jnp.arange(N * HW, dtype=jnp.int32)
    pos = idx % HW
    xcol = pos % W
    yrow = pos // W
    ones = jnp.ones((N * HW,), jnp.float32)
    masks = []
    for dy in range(3):
        for dx in range(3):
            m = ones
            if dy == 0:
                m = m * (yrow != 0)
            elif dy == 2:
                m = m * (yrow != H - 1)
            if dx == 0:
                m = m * (xcol != 0)
            elif dx == 2:
                m = m * (xcol != W - 1)
            masks.append(m)
    return jnp.stack(masks, axis=0).reshape(9, 1, N * HW).astype(jnp.float32)


def prepare_layer_params(raw):
    """Fold Scale into the BatchNorm affine and repack conv weights for the
    kernel's (channels-on-sublanes, batch*spatial-on-lanes) layout."""
    cin = raw["bn1_w"].shape[0]
    c4 = raw["w1"].shape[0]      # w1: (C4, Cin, 1, 1)  PyTorch OIHW
    g = raw["w2"].shape[0]       # w2: (G, C4, 3, 3)    PyTorch OIHW
    g1 = (raw["bn1_w"] * raw["sc1_g"]).reshape(cin, 1)
    c1 = (raw["bn1_b"] * raw["sc1_g"] + raw["sc1_b"]).reshape(cin, 1)
    g2 = (raw["bn2_w"] * raw["sc2_g"]).reshape(c4, 1)
    c2 = (raw["bn2_b"] * raw["sc2_g"] + raw["sc2_b"]).reshape(c4, 1)
    bn1p = jnp.stack([g1, c1], axis=0)            # (2, Cin, 1)
    bn2p = jnp.stack([g2, c2], axis=0)            # (2, C4, 1)
    w1t = raw["w1"].reshape(c4, cin)              # (C4, Cin)
    # w2tap[t, g, c] = w2[g, c, dy, dx] with t = dy*3 + dx
    w2tap = jnp.transpose(raw["w2"], (2, 3, 0, 1)).reshape(9, g, c4)
    return dict(bn1p=bn1p, bn2p=bn2p, w1t=w1t, w2tap=w2tap)


@jax.jit
def dense_block_forward(x_nchw, prepped_layers):
    """dense_block forward on NCHW input; returns NCHW output."""
    N, C, H, W = x_nchw.shape
    NHW = N * H * W
    feats = jnp.transpose(x_nchw, (1, 0, 2, 3)).reshape(C, NHW)
    masks = _make_tap_masks(N, H, W)
    out = _dense_block_call(feats, masks, prepped_layers, N, H, W)
    c_final = out.shape[0]
    return jnp.transpose(out.reshape(c_final, N, H, W), (1, 0, 2, 3))
    # TODO(synk): F.dropout (dropout_rate=0 in this config) and BatchNorm
    # running-stat updates (training-time state mutation) are omitted.


# ----------------------------------------------------------------------------
# Pure-JAX reference (for correctness check) — uses raw PyTorch-layout params.
# ----------------------------------------------------------------------------
def conv_block_ref(x, raw):
    m1 = x.mean((0, 2, 3), keepdims=True)
    v1 = x.var((0, 2, 3), keepdims=True)
    y = (x - m1) / jnp.sqrt(v1 + EPS)
    y = y * raw["bn1_w"][None, :, None, None] + raw["bn1_b"][None, :, None, None]
    y = y * raw["sc1_g"][None, :, None, None] + raw["sc1_b"][None, :, None, None]
    y = jnp.maximum(y, 0.0)
    y = jax.lax.conv_general_dilated(
        y, raw["w1"], (1, 1), "VALID",
        dimension_numbers=("NCHW", "OIHW", "NCHW"))
    m2 = y.mean((0, 2, 3), keepdims=True)
    v2 = y.var((0, 2, 3), keepdims=True)
    z = (y - m2) / jnp.sqrt(v2 + EPS)
    z = z * raw["bn2_w"][None, :, None, None] + raw["bn2_b"][None, :, None, None]
    z = z * raw["sc2_g"][None, :, None, None] + raw["sc2_b"][None, :, None, None]
    z = jnp.maximum(z, 0.0)
    return jax.lax.conv_general_dilated(
        z, raw["w2"], (1, 1), ((1, 1), (1, 1)),
        dimension_numbers=("NCHW", "OIHW", "NCHW"))


def dense_block_ref(x, raw_layers):
    feats = x
    for raw in raw_layers:
        feats = jnp.concatenate([feats, conv_block_ref(feats, raw)], axis=1)
    return feats


# ----------------------------------------------------------------------------
# Deterministic parameter construction (PyTorch layouts).
# ----------------------------------------------------------------------------
def make_layer_params(key, cin, growth_rate):
    c4 = 4 * growth_rate
    ks = jax.random.split(key, 10)
    f32 = jnp.float32
    return dict(
        bn1_w=(1.0 + 0.1 * jax.random.normal(ks[0], (cin,))).astype(f32),
        bn1_b=(0.1 * jax.random.normal(ks[1], (cin,))).astype(f32),
        sc1_g=(1.0 + 0.1 * jax.random.normal(ks[2], (cin,))).astype(f32),
        sc1_b=(0.1 * jax.random.normal(ks[3], (cin,))).astype(f32),
        w1=(0.2 * jax.random.normal(ks[4], (c4, cin, 1, 1))).astype(f32),
        bn2_w=(1.0 + 0.1 * jax.random.normal(ks[5], (c4,))).astype(f32),
        bn2_b=(0.1 * jax.random.normal(ks[6], (c4,))).astype(f32),
        sc2_g=(1.0 + 0.1 * jax.random.normal(ks[7], (c4,))).astype(f32),
        sc2_b=(0.1 * jax.random.normal(ks[8], (c4,))).astype(f32),
        w2=(0.2 * jax.random.normal(ks[9], (growth_rate, c4, 3, 3))).astype(f32),
    )


if __name__ == "__main__":
    # dense_block(nb_layers=2, nb_filter=4, growth_rate=4), input (2, 4, 16, 16)
    nb_layers, nb_filter, growth_rate = 2, 4, 4
    N, H, W = 2, 16, 16

    key = jax.random.PRNGKey(0)
    kx, kp = jax.random.split(key)
    x = jax.random.normal(kx, (N, nb_filter, H, W), dtype=jnp.float32)

    layer_keys = jax.random.split(kp, nb_layers)
    raw_layers = [
        make_layer_params(layer_keys[i], nb_filter + i * growth_rate, growth_rate)
        for i in range(nb_layers)
    ]
    prepped = [prepare_layer_params(raw) for raw in raw_layers]

    out = jax.block_until_ready(dense_block_forward(x, prepped))

    expected_channels = nb_filter + nb_layers * growth_rate
    assert out.shape == (N, expected_channels, H, W), out.shape

    ref = jax.block_until_ready(dense_block_ref(x, raw_layers))
    max_err = float(jnp.max(jnp.abs(out - ref)))
    if max_err > 1e-3:
        raise AssertionError(f"Pallas output mismatch vs reference: max_err={max_err}")

    print("KERNEL_OK")
</pallas_src>

<mosaic_0001>
module attributes {stable_mosaic.version = 11 : i64} {
  func.func @_dense_block_kernel(%arg0: i32, %arg1: memref<4x512xf32, #tpu.memory_space<vmem>>, %arg2: memref<9x1x512xf32, #tpu.memory_space<vmem>>, %arg3: memref<2x4x1xf32, #tpu.memory_space<vmem>>, %arg4: memref<2x16x1xf32, #tpu.memory_space<vmem>>, %arg5: memref<16x4xf32, #tpu.memory_space<vmem>>, %arg6: memref<9x4x16xf32, #tpu.memory_space<vmem>>, %arg7: memref<2x8x1xf32, #tpu.memory_space<vmem>>, %arg8: memref<2x16x1xf32, #tpu.memory_space<vmem>>, %arg9: memref<16x8xf32, #tpu.memory_space<vmem>>, %arg10: memref<9x4x16xf32, #tpu.memory_space<vmem>>, %arg11: memref<12x512xf32, #tpu.memory_space<vmem>>) attributes {dimension_semantics = [#tpu.dimension_semantics<arbitrary>], iteration_bounds = array<i64: 1>, scalar_prefetch = 0 : i64, scratch_operands = 0 : i64, tpu.core_type = #tpu.core_type<tc>, window_params = [{pipeline_mode = #tpu.pipeline_mode<synchronous>, transform_indices = @transform_0, window_bounds = array<i64: 4, 512>}, {pipeline_mode = #tpu.pipeline_mode<synchronous>, transform_indices = @transform_1, window_bounds = array<i64: 9, 1, 512>}, {pipeline_mode = #tpu.pipeline_mode<synchronous>, transform_indices = @transform_2, window_bounds = array<i64: 2, 4, 1>}, {pipeline_mode = #tpu.pipeline_mode<synchronous>, transform_indices = @transform_3, window_bounds = array<i64: 2, 16, 1>}, {pipeline_mode = #tpu.pipeline_mode<synchronous>, transform_indices = @transform_4, window_bounds = array<i64: 16, 4>}, {pipeline_mode = #tpu.pipeline_mode<synchronous>, transform_indices = @transform_5, window_bounds = array<i64: 9, 4, 16>}, {pipeline_mode = #tpu.pipeline_mode<synchronous>, transform_indices = @transform_6, window_bounds = array<i64: 2, 8, 1>}, {pipeline_mode = #tpu.pipeline_mode<synchronous>, transform_indices = @transform_7, window_bounds = array<i64: 2, 16, 1>}, {pipeline_mode = #tpu.pipeline_mode<synchronous>, transform_indices = @transform_8, window_bounds = array<i64: 16, 8>}, {pipeline_mode = #tpu.pipeline_mode<synchronous>, transform_indices = @transform_9, window_bounds = array<i64: 9, 4, 16>}, {pipeline_mode = #tpu.pipeline_mode<synchronous>, transform_indices = @transform_10, window_bounds = array<i64: 12, 512>}]} {
    %c0 = arith.constant 0 : index
    %c0_0 = arith.constant 0 : index
    %0 = vector.load %arg1[%c0, %c0_0] : memref<4x512xf32, #tpu.memory_space<vmem>>, vector<4x512xf32>
    %c0_1 = arith.constant 0 : index
    %c0_2 = arith.constant 0 : index
    %1 = vector.load %arg11[%c0_1, %c0_2] : memref<12x512xf32, #tpu.memory_space<vmem>>, vector<4x512xf32>
    tpu.vector_store %arg11[%c0_1, %c0_2], %0 {strides = array<i32>} : memref<12x512xf32, #tpu.memory_space<vmem>>, vector<4x512xf32>,
    %c0_3 = arith.constant 0 : index
    %c0_4 = arith.constant 0 : index
    %2 = vector.load %arg1[%c0_3, %c0_4] : memref<4x512xf32, #tpu.memory_space<vmem>>, vector<4x512xf32>
    %c0_5 = arith.constant 0 : index
    %c0_6 = arith.constant 0 : index
    %c0_7 = arith.constant 0 : index
    %3 = vector.load %arg3[%c0_5, %c0_6, %c0_7] : memref<2x4x1xf32, #tpu.memory_space<vmem>>, vector<1x4x1xf32>
    %4 = vector.shape_cast %3 : vector<1x4x1xf32> to vector<4x1xf32>
    %c1 = arith.constant 1 : index
    %c0_8 = arith.constant 0 : index
    %c0_9 = arith.constant 0 : index
    %5 = vector.load %arg3[%c1, %c0_8, %c0_9] : memref<2x4x1xf32, #tpu.memory_space<vmem>>, vector<1x4x1xf32>
    %6 = vector.shape_cast %5 : vector<1x4x1xf32> to vector<4x1xf32>
    %c0_10 = arith.constant 0 : index
    %c0_11 = arith.constant 0 : index
    %c0_12 = arith.constant 0 : index
    %7 = vector.load %arg4[%c0_10, %c0_11, %c0_12] : memref<2x16x1xf32, #tpu.memory_space<vmem>>, vector<1x16x1xf32>
    %8 = vector.shape_cast %7 : vector<1x16x1xf32> to vector<16x1xf32>
    %c1_13 = arith.constant 1 : index
    %c0_14 = arith.constant 0 : index
    %c0_15 = arith.constant 0 : index
    %9 = vector.load %arg4[%c1_13, %c0_14, %c0_15] : memref<2x16x1xf32, #tpu.memory_space<vmem>>, vector<1x16x1xf32>
    %10 = vector.shape_cast %9 : vector<1x16x1xf32> to vector<16x1xf32>
    %cst = arith.constant dense<0.000000e+00> : vector<4xf32>
    %11 = vector.multi_reduction <add>, %2, %cst [1] : vector<4x512xf32> to vector<4xf32>
    %12 = vector.shape_cast %11 : vector<4xf32> to vector<4x1xf32>
    %13 = arith.mulf %2, %2 : vector<4x512xf32>
    %cst_16 = arith.constant dense<0.000000e+00> : vector<4xf32>
    %14 = vector.multi_reduction <add>, %13, %cst_16 [1] : vector<4x512xf32> to vector<4xf32>
    %15 = vector.shape_cast %14 : vector<4xf32> to vector<4x1xf32>
    %cst_17 = arith.constant 0.001953125 : f32
    %16 = vector.broadcast %cst_17 : f32 to vector<4x1xf32>
    %17 = arith.mulf %12, %16 : vector<4x1xf32>
    %cst_18 = arith.constant 0.001953125 : f32
    %18 = vector.broadcast %cst_18 : f32 to vector<4x1xf32>
    %19 = arith.mulf %15, %18 : vector<4x1xf32>
    %20 = arith.mulf %17, %17 : vector<4x1xf32>
    %21 = arith.subf %19, %20 : vector<4x1xf32>
    %cst_19 = arith.constant 1.100000e-05 : f32
    %22 = vector.broadcast %cst_19 : f32 to vector<4x1xf32>
    %23 = arith.addf %21, %22 : vector<4x1xf32>
    %24 = math.rsqrt %23 : vector<4x1xf32>
    %25 = arith.mulf %4, %24 : vector<4x1xf32>
    %26 = arith.mulf %17, %25 : vector<4x1xf32>
    %27 = arith.subf %6, %26 : vector<4x1xf32>
    %28 = vector.broadcast %25 : vector<4x1xf32> to vector<4x512xf32>
    %29 = arith.mulf %2, %28 : vector<4x512xf32>
    %30 = vector.broadcast %27 : vector<4x1xf32> to vector<4x512xf32>
    %31 = arith.addf %29, %30 : vector<4x512xf32>
    %cst_20 = arith.constant 0.000000e+00 : f32
    %32 = vector.broadcast %cst_20 : f32 to vector<4x512xf32>
    %33 = arith.maximumf %31, %32 : vector<4x512xf32>
    %c0_21 = arith.constant 0 : index
    %c0_22 = arith.constant 0 : index
    %34 = vector.load %arg5[%c0_21, %c0_22] : memref<16x4xf32, #tpu.memory_space<vmem>>, vector<16x4xf32>
    %cst_23 = arith.constant dense<0.000000e+00> : vector<16x512xf32>
    %35 = tpu.matmul %34, %33, %cst_23 {dimension_numbers = #tpu.dot_dimension_numbers<[1], [0], [0], [1], [0, 0, 1, 1], [], []>} : vector<16x4xf32>, vector<4x512xf32>, vector<16x512xf32> -> vector<16x512xf32>
    %cst_24 = arith.constant dense<0.000000e+00> : vector<16xf32>
    %36 = vector.multi_reduction <add>, %35, %cst_24 [1] : vector<16x512xf32> to vector<16xf32>
    %37 = vector.shape_cast %36 : vector<16xf32> to vector<16x1xf32>
    %38 = arith.mulf %35, %35 : vector<16x512xf32>
    %cst_25 = arith.constant dense<0.000000e+00> : vector<16xf32>
    %39 = vector.multi_reduction <add>, %38, %cst_25 [1] : vector<16x512xf32> to vector<16xf32>
    %40 = vector.shape_cast %39 : vector<16xf32> to vector<16x1xf32>
    %cst_26 = arith.constant 0.001953125 : f32
    %41 = vector.broadcast %cst_26 : f32 to vector<16x1xf32>
    %42 = arith.mulf %37, %41 : vector<16x1xf32>
    %cst_27 = arith.constant 0.001953125 : f32
    %43 = vector.broadcast %cst_27 : f32 to vector<16x1xf32>
    %44 = arith.mulf %40, %43 : vector<16x1xf32>
    %45 = arith.mulf %42, %42 : vector<16x1xf32>
    %46 = arith.subf %44, %45 : vector<16x1xf32>
    %cst_28 = arith.constant 1.100000e-05 : f32
    %47 = vector.broadcast %cst_28 : f32 to vector<16x1xf32>
    %48 = arith.addf %46, %47 : vector<16x1xf32>
    %49 = math.rsqrt %48 : vector<16x1xf32>
    %50 = arith.mulf %8, %49 : vector<16x1xf32>
    %51 = arith.mulf %42, %50 : vector<16x1xf32>
    %52 = arith.subf %10, %51 : vector<16x1xf32>
    %53 = vector.broadcast %50 : vector<16x1xf32> to vector<16x512xf32>
    %54 = arith.mulf %35, %53 : vector<16x512xf32>
    %55 = vector.broadcast %52 : vector<16x1xf32> to vector<16x512xf32>
    %56 = arith.addf %54, %55 : vector<16x512xf32>
    %cst_29 = arith.constant 0.000000e+00 : f32
    %57 = vector.broadcast %cst_29 : f32 to vector<16x512xf32>
    %58 = arith.maximumf %56, %57 : vector<16x512xf32>
    %c17_i32 = arith.constant 17 : i32
    %59 = tpu.dynamic_rotate %58 by %c17_i32 dim 1 : vector<16x512xf32>, i32 -> vector<16x512xf32>
    %c0_30 = arith.constant 0 : index
    %c0_31 = arith.constant 0 : index
    %c0_32 = arith.constant 0 : index
    %60 = vector.load %arg2[%c0_30, %c0_31, %c0_32] : memref<9x1x512xf32, #tpu.memory_space<vmem>>, vector<1x1x512xf32>
    %61 = vector.shape_cast %60 : vector<1x1x512xf32> to vector<1x512xf32>
    %62 = vector.broadcast %61 : vector<1x512xf32> to vector<16x512xf32>
    %63 = arith.mulf %59, %62 : vector<16x512xf32>
    %c0_33 = arith.constant 0 : index
    %c0_34 = arith.constant 0 : index
    %c0_35 = arith.constant 0 : index
    %64 = vector.load %arg6[%c0_33, %c0_34, %c0_35] : memref<9x4x16xf32, #tpu.memory_space<vmem>>, vector<1x4x16xf32>
    %65 = vector.shape_cast %64 : vector<1x4x16xf32> to vector<4x16xf32>
    %cst_36 = arith.constant dense<0.000000e+00> : vector<4x512xf32>
    %66 = tpu.matmul %65, %63, %cst_36 {dimension_numbers = #tpu.dot_dimension_numbers<[1], [0], [0], [1], [0, 0, 1, 1], [], []>} : vector<4x16xf32>, vector<16x512xf32>, vector<4x512xf32> -> vector<4x512xf32>
    %c16_i32 = arith.constant 16 : i32
    %67 = tpu.dynamic_rotate %58 by %c16_i32 dim 1 : vector<16x512xf32>, i32 -> vector<16x512xf32>
    %c1_37 = arith.constant 1 : index
    %c0_38 = arith.constant 0 : index
    %c0_39 = arith.constant 0 : index
    %68 = vector.load %arg2[%c1_37, %c0_38, %c0_39] : memref<9x1x512xf32, #tpu.memory_space<vmem>>, vector<1x1x512xf32>
    %69 = vector.shape_cast %68 : vector<1x1x512xf32> to vector<1x512xf32>
    %70 = vector.broadcast %69 : vector<1x512xf32> to vector<16x512xf32>
    %71 = arith.mulf %67, %70 : vector<16x512xf32>
    %c1_40 = arith.constant 1 : index
    %c0_41 = arith.constant 0 : index
    %c0_42 = arith.constant 0 : index
    %72 = vector.load %arg6[%c1_40, %c0_41, %c0_42] : memref<9x4x16xf32, #tpu.memory_space<vmem>>, vector<1x4x16xf32>
    %73 = vector.shape_cast %72 : vector<1x4x16xf32> to vector<4x16xf32>
    %cst_43 = arith.constant dense<0.000000e+00> : vector<4x512xf32>
    %74 = tpu.matmul %73, %71, %cst_43 {dimension_numbers = #tpu.dot_dimension_numbers<[1], [0], [0], [1], [0, 0, 1, 1], [], []>} : vector<4x16xf32>, vector<16x512xf32>, vector<4x512xf32> -> vector<4x512xf32>
    %75 = arith.addf %66, %74 : vector<4x512xf32>
    %c15_i32 = arith.constant 15 : i32
    %76 = tpu.dynamic_rotate %58 by %c15_i32 dim 1 : vector<16x512xf32>, i32 -> vector<16x512xf32>
    %c2 = arith.constant 2 : index
    %c0_44 = arith.constant 0 : index
    %c0_45 = arith.constant 0 : index
    %77 = vector.load %arg2[%c2, %c0_44, %c0_45] : memref<9x1x512xf32, #tpu.memory_space<vmem>>, vector<1x1x512xf32>
    %78 = vector.shape_cast %77 : vector<1x1x512xf32> to vector<1x512xf32>
    %79 = vector.broadcast %78 : vector<1x512xf32> to vector<16x512xf32>
    %80 = arith.mulf %76, %79 : vector<16x512xf32>
    %c2_46 = arith.constant 2 : index
    %c0_47 = arith.constant 0 : index
    %c0_48 = arith.constant 0 : index
    %81 = vector.load %arg6[%c2_46, %c0_47, %c0_48] : memref<9x4x16xf32, #tpu.memory_space<vmem>>, vector<1x4x16xf32>
    %82 = vector.shape_cast %81 : vector<1x4x16xf32> to vector<4x16xf32>
    %cst_49 = arith.constant dense<0.000000e+00> : vector<4x512xf32>
    %83 = tpu.matmul %82, %80, %cst_49 {dimension_numbers = #tpu.dot_dimension_numbers<[1], [0], [0], [1], [0, 0, 1, 1], [], []>} : vector<4x16xf32>, vector<16x512xf32>, vector<4x512xf32> -> vector<4x512xf32>
    %84 = arith.addf %75, %83 : vector<4x512xf32>
    %c1_i32 = arith.constant 1 : i32
    %85 = tpu.dynamic_rotate %58 by %c1_i32 dim 1 : vector<16x512xf32>, i32 -> vector<16x512xf32>
    %c3 = arith.constant 3 : index
    %c0_50 = arith.constant 0 : index
    %c0_51 = arith.constant 0 : index
    %86 = vector.load %arg2[%c3, %c0_50, %c0_51] : memref<9x1x512xf32, #tpu.memory_space<vmem>>, vector<1x1x512xf32>
    %87 = vector.shape_cast %86 : vector<1x1x512xf32> to vector<1x512xf32>
    %88 = vector.broadcast %87 : vector<1x512xf32> to vector<16x512xf32>
    %89 = arith.mulf %85, %88 : vector<16x512xf32>
    %c3_52 = arith.constant 3 : index
    %c0_53 = arith.constant 0 : index
    %c0_54 = arith.constant 0 : index
    %90 = vector.load %arg6[%c3_52, %c0_53, %c0_54] : memref<9x4x16xf32, #tpu.memory_space<vmem>>, vector<1x4x16xf32>
    %91 = vector.shape_cast %90 : vector<1x4x16xf32> to vector<4x16xf32>
    %cst_55 = arith.constant dense<0.000000e+00> : vector<4x512xf32>
    %92 = tpu.matmul %91, %89, %cst_55 {dimension_numbers = #tpu.dot_dimension_numbers<[1], [0], [0], [1], [0, 0, 1, 1], [], []>} : vector<4x16xf32>, vector<16x512xf32>, vector<4x512xf32> -> vector<4x512xf32>
    %93 = arith.addf %84, %92 : vector<4x512xf32>
    %c4 = arith.constant 4 : index
    %c0_56 = arith.constant 0 : index
    %c0_57 = arith.constant 0 : index
    %94 = vector.load %arg6[%c4, %c0_56, %c0_57] : memref<9x4x16xf32, #tpu.memory_space<vmem>>, vector<1x4x16xf32>
    %95 = vector.shape_cast %94 : vector<1x4x16xf32> to vector<4x16xf32>
    %cst_58 = arith.constant dense<0.000000e+00> : vector<4x512xf32>
    %96 = tpu.matmul %95, %58, %cst_58 {dimension_numbers = #tpu.dot_dimension_numbers<[1], [0], [0], [1], [0, 0, 1, 1], [], []>} : vector<4x16xf32>, vector<16x512xf32>, vector<4x512xf32> -> vector<4x512xf32>
    %97 = arith.addf %93, %96 : vector<4x512xf32>
    %c511_i32 = arith.constant 511 : i32
    %98 = tpu.dynamic_rotate %58 by %c511_i32 dim 1 : vector<16x512xf32>, i32 -> vector<16x512xf32>
    %c5 = arith.constant 5 : index
    %c0_59 = arith.constant 0 : index
    %c0_60 = arith.constant 0 : index
    %99 = vector.load %arg2[%c5, %c0_59, %c0_60] : memref<9x1x512xf32, #tpu.memory_space<vmem>>, vector<1x1x512xf32>
    %100 = vector.shape_cast %99 : vector<1x1x512xf32> to vector<1x512xf32>
    %101 = vector.broadcast %100 : vector<1x512xf32> to vector<16x512xf32>
    %102 = arith.mulf %98, %101 : vector<16x512xf32>
    %c5_61 = arith.constant 5 : index
    %c0_62 = arith.constant 0 : index
    %c0_63 = arith.constant 0 : index
    %103 = vector.load %arg6[%c5_61, %c0_62, %c0_63] : memref<9x4x16xf32, #tpu.memory_space<vmem>>, vector<1x4x16xf32>
    %104 = vector.shape_cast %103 : vector<1x4x16xf32> to vector<4x16xf32>
    %cst_64 = arith.constant dense<0.000000e+00> : vector<4x512xf32>
    %105 = tpu.matmul %104, %102, %cst_64 {dimension_numbers = #tpu.dot_dimension_numbers<[1], [0], [0], [1], [0, 0, 1, 1], [], []>} : vector<4x16xf32>, vector<16x512xf32>, vector<4x512xf32> -> vector<4x512xf32>
    %106 = arith.addf %97, %105 : vector<4x512xf32>
    %c497_i32 = arith.constant 497 : i32
    %107 = tpu.dynamic_rotate %58 by %c497_i32 dim 1 : vector<16x512xf32>, i32 -> vector<16x512xf32>
    %c6 = arith.constant 6 : index
    %c0_65 = arith.constant 0 : index
    %c0_66 = arith.constant 0 : index
    %108 = vector.load %arg2[%c6, %c0_65, %c0_66] : memref<9x1x512xf32, #tpu.memory_space<vmem>>, vector<1x1x512xf32>
    %109 = vector.shape_cast %108 : vector<1x1x512xf32> to vector<1x512xf32>
    %110 = vector.broadcast %109 : vector<1x512xf32> to vector<16x512xf32>
    %111 = arith.mulf %107, %110 : vector<16x512xf32>
    %c6_67 = arith.constant 6 : index
    %c0_68 = arith.constant 0 : index
    %c0_69 = arith.constant 0 : index
    %112 = vector.load %arg6[%c6_67, %c0_68, %c0_69] : memref<9x4x16xf32, #tpu.memory_space<vmem>>, vector<1x4x16xf32>
    %113 = vector.shape_cast %112 : vector<1x4x16xf32> to vector<4x16xf32>
    %cst_70 = arith.constant dense<0.000000e+00> : vector<4x512xf32>
    %114 = tpu.matmul %113, %111, %cst_70 {dimension_numbers = #tpu.dot_dimension_numbers<[1], [0], [0], [1], [0, 0, 1, 1], [], []>} : vector<4x16xf32>, vector<16x512xf32>, vector<4x512xf32> -> vector<4x512xf32>
    %115 = arith.addf %106, %114 : vector<4x512xf32>
    %c496_i32 = arith.constant 496 : i32
    %116 = tpu.dynamic_rotate %58 by %c496_i32 dim 1 : vector<16x512xf32>, i32 -> vector<16x512xf32>
    %c7 = arith.constant 7 : index
    %c0_71 = arith.constant 0 : index
    %c0_72 = arith.constant 0 : index
    %117 = vector.load %arg2[%c7, %c0_71, %c0_72] : memref<9x1x512xf32, #tpu.memory_space<vmem>>, vector<1x1x512xf32>
    %118 = vector.shape_cast %117 : vector<1x1x512xf32> to vector<1x512xf32>
    %119 = vector.broadcast %118 : vector<1x512xf32> to vector<16x512xf32>
    %120 = arith.mulf %116, %119 : vector<16x512xf32>
    %c7_73 = arith.constant 7 : index
    %c0_74 = arith.constant 0 : index
    %c0_75 = arith.constant 0 : index
    %121 = vector.load %arg6[%c7_73, %c0_74, %c0_75] : memref<9x4x16xf32, #tpu.memory_space<vmem>>, vector<1x4x16xf32>
    %122 = vector.shape_cast %121 : vector<1x4x16xf32> to vector<4x16xf32>
    %cst_76 = arith.constant dense<0.000000e+00> : vector<4x512xf32>
    %123 = tpu.matmul %122, %120, %cst_76 {dimension_numbers = #tpu.dot_dimension_numbers<[1], [0], [0], [1], [0, 0, 1, 1], [], []>} : vector<4x16xf32>, vector<16x512xf32>, vector<4x512xf32> -> vector<4x512xf32>
    %124 = arith.addf %115, %123 : vector<4x512xf32>
    %c495_i32 = arith.constant 495 : i32
    %125 = tpu.dynamic_rotate %58 by %c495_i32 dim 1 : vector<16x512xf32>, i32 -> vector<16x512xf32>
    %c8 = arith.constant 8 : index
    %c0_77 = arith.constant 0 : index
    %c0_78 = arith.constant 0 : index
    %126 = vector.load %arg2[%c8, %c0_77, %c0_78] : memref<9x1x512xf32, #tpu.memory_space<vmem>>, vector<1x1x512xf32>
    %127 = vector.shape_cast %126 : vector<1x1x512xf32> to vector<1x512xf32>
    %128 = vector.broadcast %127 : vector<1x512xf32> to vector<16x512xf32>
    %129 = arith.mulf %125, %128 : vector<16x512xf32>
    %c8_79 = arith.constant 8 : index
    %c0_80 = arith.constant 0 : index
    %c0_81 = arith.constant 0 : index
    %130 = vector.load %arg6[%c8_79, %c0_80, %c0_81] : memref<9x4x16xf32, #tpu.memory_space<vmem>>, vector<1x4x16xf32>
    %131 = vector.shape_cast %130 : vector<1x4x16xf32> to vector<4x16xf32>
    %cst_82 = arith.constant dense<0.000000e+00> : vector<4x512xf32>
    %132 = tpu.matmul %131, %129, %cst_82 {dimension_numbers = #tpu.dot_dimension_numbers<[1], [0], [0], [1], [0, 0, 1, 1], [], []>} : vector<4x16xf32>, vector<16x512xf32>, vector<4x512xf32> -> vector<4x512xf32>
    %133 = arith.addf %124, %132 : vector<4x512xf32>
    %c4_83 = arith.constant 4 : index
    %c0_84 = arith.constant 0 : index
    %134 = vector.load %arg11[%c4_83, %c0_84] : memref<12x512xf32, #tpu.memory_space<vmem>>, vector<4x512xf32>
    tpu.vector_store %arg11[%c4_83, %c0_84], %133 {strides = array<i32>} : memref<12x512xf32, #tpu.memory_space<vmem>>, vector<4x512xf32>,
    %c0_85 = arith.constant 0 : index
    %c0_86 = arith.constant 0 : index
    %135 = vector.load %arg11[%c0_85, %c0_86] : memref<12x512xf32, #tpu.memory_space<vmem>>, vector<8x512xf32>
    %c0_87 = arith.constant 0 : index
    %c0_88 = arith.constant 0 : index
    %c0_89 = arith.constant 0 : index
    %136 = vector.load %arg7[%c0_87, %c0_88, %c0_89] : memref<2x8x1xf32, #tpu.memory_space<vmem>>, vector<1x8x1xf32>
    %137 = vector.shape_cast %136 : vector<1x8x1xf32> to vector<8x1xf32>
    %c1_90 = arith.constant 1 : index
    %c0_91 = arith.constant 0 : index
    %c0_92 = arith.constant 0 : index
    %138 = vector.load %arg7[%c1_90, %c0_91, %c0_92] : memref<2x8x1xf32, #tpu.memory_space<vmem>>, vector<1x8x1xf32>
    %139 = vector.shape_cast %138 : vector<1x8x1xf32> to vector<8x1xf32>
    %c0_93 = arith.constant 0 : index
    %c0_94 = arith.constant 0 : index
    %c0_95 = arith.constant 0 : index
    %140 = vector.load %arg8[%c0_93, %c0_94, %c0_95] : memref<2x16x1xf32, #tpu.memory_space<vmem>>, vector<1x16x1xf32>
    %141 = vector.shape_cast %140 : vector<1x16x1xf32> to vector<16x1xf32>
    %c1_96 = arith.constant 1 : index
    %c0_97 = arith.constant 0 : index
    %c0_98 = arith.constant 0 : index
    %142 = vector.load %arg8[%c1_96, %c0_97, %c0_98] : memref<2x16x1xf32, #tpu.memory_space<vmem>>, vector<1x16x1xf32>
    %143 = vector.shape_cast %142 : vector<1x16x1xf32> to vector<16x1xf32>
    %cst_99 = arith.constant dense<0.000000e+00> : vector<8xf32>
    %144 = vector.multi_reduction <add>, %135, %cst_99 [1] : vector<8x512xf32> to vector<8xf32>
    %145 = vector.shape_cast %144 : vector<8xf32> to vector<8x1xf32>
    %146 = arith.mulf %135, %135 : vector<8x512xf32>
    %cst_100 = arith.constant dense<0.000000e+00> : vector<8xf32>
    %147 = vector.multi_reduction <add>, %146, %cst_100 [1] : vector<8x512xf32> to vector<8xf32>
    %148 = vector.shape_cast %147 : vector<8xf32> to vector<8x1xf32>
    %cst_101 = arith.constant 0.001953125 : f32
    %149 = vector.broadcast %cst_101 : f32 to vector<8x1xf32>
    %150 = arith.mulf %145, %149 : vector<8x1xf32>
    %cst_102 = arith.constant 0.001953125 : f32
    %151 = vector.broadcast %cst_102 : f32 to vector<8x1xf32>
    %152 = arith.mulf %148, %151 : vector<8x1xf32>
    %153 = arith.mulf %150, %150 : vector<8x1xf32>
    %154 = arith.subf %152, %153 : vector<8x1xf32>
    %cst_103 = arith.constant 1.100000e-05 : f32
    %155 = vector.broadcast %cst_103 : f32 to vector<8x1xf32>
    %156 = arith.addf %154, %155 : vector<8x1xf32>
    %157 = math.rsqrt %156 : vector<8x1xf32>
    %158 = arith.mulf %137, %157 : vector<8x1xf32>
    %159 = arith.mulf %150, %158 : vector<8x1xf32>
    %160 = arith.subf %139, %159 : vector<8x1xf32>
    %161 = vector.broadcast %158 : vector<8x1xf32> to vector<8x512xf32>
    %162 = arith.mulf %135, %161 : vector<8x512xf32>
    %163 = vector.broadcast %160 : vector<8x1xf32> to vector<8x512xf32>
    %164 = arith.addf %162, %163 : vector<8x512xf32>
    %cst_104 = arith.constant 0.000000e+00 : f32
    %165 = vector.broadcast %cst_104 : f32 to vector<8x512xf32>
    %166 = arith.maximumf %164, %165 : vector<8x512xf32>
    %c0_105 = arith.constant 0 : index
    %c0_106 = arith.constant 0 : index
    %167 = vector.load %arg9[%c0_105, %c0_106] : memref<16x8xf32, #tpu.memory_space<vmem>>, vector<16x8xf32>
    %cst_107 = arith.constant dense<0.000000e+00> : vector<16x512xf32>
    %168 = tpu.matmul %167, %166, %cst_107 {dimension_numbers = #tpu.dot_dimension_numbers<[1], [0], [0], [1], [0, 0, 1, 1], [], []>} : vector<16x8xf32>, vector<8x512xf32>, vector<16x512xf32> -> vector<16x512xf32>
    %cst_108 = arith.constant dense<0.000000e+00> : vector<16xf32>
    %169 = vector.multi_reduction <add>, %168, %cst_108 [1] : vector<16x512xf32> to vector<16xf32>
    %170 = vector.shape_cast %169 : vector<16xf32> to vector<16x1xf32>
    %171 = arith.mulf %168, %168 : vector<16x512xf32>
    %cst_109 = arith.constant dense<0.000000e+00> : vector<16xf32>
    %172 = vector.multi_reduction <add>, %171, %cst_109 [1] : vector<16x512xf32> to vector<16xf32>
    %173 = vector.shape_cast %172 : vector<16xf32> to vector<16x1xf32>
    %cst_110 = arith.constant 0.001953125 : f32
    %174 = vector.broadcast %cst_110 : f32 to vector<16x1xf32>
    %175 = arith.mulf %170, %174 : vector<16x1xf32>
    %cst_111 = arith.constant 0.001953125 : f32
    %176 = vector.broadcast %cst_111 : f32 to vector<16x1xf32>
    %177 = arith.mulf %173, %176 : vector<16x1xf32>
    %178 = arith.mulf %175, %175 : vector<16x1xf32>
    %179 = arith.subf %177, %178 : vector<16x1xf32>
    %cst_112 = arith.constant 1.100000e-05 : f32
    %180 = vector.broadcast %cst_112 : f32 to vector<16x1xf32>
    %181 = arith.addf %179, %180 : vector<16x1xf32>
    %182 = math.rsqrt %181 : vector<16x1xf32>
    %183 = arith.mulf %141, %182 : vector<16x1xf32>
    %184 = arith.mulf %175, %183 : vector<16x1xf32>
    %185 = arith.subf %143, %184 : vector<16x1xf32>
    %186 = vector.broadcast %183 : vector<16x1xf32> to vector<16x512xf32>
    %187 = arith.mulf %168, %186 : vector<16x512xf32>
    %188 = vector.broadcast %185 : vector<16x1xf32> to vector<16x512xf32>
    %189 = arith.addf %187, %188 : vector<16x512xf32>
    %cst_113 = arith.constant 0.000000e+00 : f32
    %190 = vector.broadcast %cst_113 : f32 to vector<16x512xf32>
    %191 = arith.maximumf %189, %190 : vector<16x512xf32>
    %c17_i32_114 = arith.constant 17 : i32
    %192 = tpu.dynamic_rotate %191 by %c17_i32_114 dim 1 : vector<16x512xf32>, i32 -> vector<16x512xf32>
    %c0_115 = arith.constant 0 : index
    %c0_116 = arith.constant 0 : index
    %c0_117 = arith.constant 0 : index
    %193 = vector.load %arg2[%c0_115, %c0_116, %c0_117] : memref<9x1x512xf32, #tpu.memory_space<vmem>>, vector<1x1x512xf32>
    %194 = vector.shape_cast %193 : vector<1x1x512xf32> to vector<1x512xf32>
    %195 = vector.broadcast %194 : vector<1x512xf32> to vector<16x512xf32>
    %196 = arith.mulf %192, %195 : vector<16x512xf32>
    %c0_118 = arith.constant 0 : index
    %c0_119 = arith.constant 0 : index
    %c0_120 = arith.constant 0 : index
    %197 = vector.load %arg10[%c0_118, %c0_119, %c0_120] : memref<9x4x16xf32, #tpu.memory_space<vmem>>, vector<1x4x16xf32>
    %198 = vector.shape_cast %197 : vector<1x4x16xf32> to vector<4x16xf32>
    %cst_121 = arith.constant dense<0.000000e+00> : vector<4x512xf32>
    %199 = tpu.matmul %198, %196, %cst_121 {dimension_numbers = #tpu.dot_dimension_numbers<[1], [0], [0], [1], [0, 0, 1, 1], [], []>} : vector<4x16xf32>, vector<16x512xf32>, vector<4x512xf32> -> vector<4x512xf32>
    %c16_i32_122 = arith.constant 16 : i32
    %200 = tpu.dynamic_rotate %191 by %c16_i32_122 dim 1 : vector<16x512xf32>, i32 -> vector<16x512xf32>
    %c1_123 = arith.constant 1 : index
    %c0_124 = arith.constant 0 : index
    %c0_125 = arith.constant 0 : index
    %201 = vector.load %arg2[%c1_123, %c0_124, %c0_125] : memref<9x1x512xf32, #tpu.memory_space<vmem>>, vector<1x1x512xf32>
    %202 = vector.shape_cast %201 : vector<1x1x512xf32> to vector<1x512xf32>
    %203 = vector.broadcast %202 : vector<1x512xf32> to vector<16x512xf32>
    %204 = arith.mulf %200, %203 : vector<16x512xf32>
    %c1_126 = arith.constant 1 : index
    %c0_127 = arith.constant 0 : index
    %c0_128 = arith.constant 0 : index
    %205 = vector.load %arg10[%c1_126, %c0_127, %c0_128] : memref<9x4x16xf32, #tpu.memory_space<vmem>>, vector<1x4x16xf32>
    %206 = vector.shape_cast %205 : vector<1x4x16xf32> to vector<4x16xf32>
    %cst_129 = arith.constant dense<0.000000e+00> : vector<4x512xf32>
    %207 = tpu.matmul %206, %204, %cst_129 {dimension_numbers = #tpu.dot_dimension_numbers<[1], [0], [0], [1], [0, 0, 1, 1], [], []>} : vector<4x16xf32>, vector<16x512xf32>, vector<4x512xf32> -> vector<4x512xf32>
    %208 = arith.addf %199, %207 : vector<4x512xf32>
    %c15_i32_130 = arith.constant 15 : i32
    %209 = tpu.dynamic_rotate %191 by %c15_i32_130 dim 1 : vector<16x512xf32>, i32 -> vector<16x512xf32>
    %c2_131 = arith.constant 2 : index
    %c0_132 = arith.constant 0 : index
    %c0_133 = arith.constant 0 : index
    %210 = vector.load %arg2[%c2_131, %c0_132, %c0_133] : memref<9x1x512xf32, #tpu.memory_space<vmem>>, vector<1x1x512xf32>
    %211 = vector.shape_cast %210 : vector<1x1x512xf32> to vector<1x512xf32>
    %212 = vector.broadcast %211 : vector<1x512xf32> to vector<16x512xf32>
    %213 = arith.mulf %209, %212 : vector<16x512xf32>
    %c2_134 = arith.constant 2 : index
    %c0_135 = arith.constant 0 : index
    %c0_136 = arith.constant 0 : index
    %214 = vector.load %arg10[%c2_134, %c0_135, %c0_136] : memref<9x4x16xf32, #tpu.memory_space<vmem>>, vector<1x4x16xf32>
    %215 = vector.shape_cast %214 : vector<1x4x16xf32> to vector<4x16xf32>
    %cst_137 = arith.constant dense<0.000000e+00> : vector<4x512xf32>
    %216 = tpu.matmul %215, %213, %cst_137 {dimension_numbers = #tpu.dot_dimension_numbers<[1], [0], [0], [1], [0, 0, 1, 1], [], []>} : vector<4x16xf32>, vector<16x512xf32>, vector<4x512xf32> -> vector<4x512xf32>
    %217 = arith.addf %208, %216 : vector<4x512xf32>
    %c1_i32_138 = arith.constant 1 : i32
    %218 = tpu.dynamic_rotate %191 by %c1_i32_138 dim 1 : vector<16x512xf32>, i32 -> vector<16x512xf32>
    %c3_139 = arith.constant 3 : index
    %c0_140 = arith.constant 0 : index
    %c0_141 = arith.constant 0 : index
    %219 = vector.load %arg2[%c3_139, %c0_140, %c0_141] : memref<9x1x512xf32, #tpu.memory_space<vmem>>, vector<1x1x512xf32>
    %220 = vector.shape_cast %219 : vector<1x1x512xf32> to vector<1x512xf32>
    %221 = vector.broadcast %220 : vector<1x512xf32> to vector<16x512xf32>
    %222 = arith.mulf %218, %221 : vector<16x512xf32>
    %c3_142 = arith.constant 3 : index
    %c0_143 = arith.constant 0 : index
    %c0_144 = arith.constant 0 : index
    %223 = vector.load %arg10[%c3_142, %c0_143, %c0_144] : memref<9x4x16xf32, #tpu.memory_space<vmem>>, vector<1x4x16xf32>
    %224 = vector.shape_cast %223 : vector<1x4x16xf32> to vector<4x16xf32>
    %cst_145 = arith.constant dense<0.000000e+00> : vector<4x512xf32>
    %225 = tpu.matmul %224, %222, %cst_145 {dimension_numbers = #tpu.dot_dimension_numbers<[1], [0], [0], [1], [0, 0, 1, 1], [], []>} : vector<4x16xf32>, vector<16x512xf32>, vector<4x512xf32> -> vector<4x512xf32>
    %226 = arith.addf %217, %225 : vector<4x512xf32>
    %c4_146 = arith.constant 4 : index
    %c0_147 = arith.constant 0 : index
    %c0_148 = arith.constant 0 : index
    %227 = vector.load %arg10[%c4_146, %c0_147, %c0_148] : memref<9x4x16xf32, #tpu.memory_space<vmem>>, vector<1x4x16xf32>
    %228 = vector.shape_cast %227 : vector<1x4x16xf32> to vector<4x16xf32>
    %cst_149 = arith.constant dense<0.000000e+00> : vector<4x512xf32>
    %229 = tpu.matmul %228, %191, %cst_149 {dimension_numbers = #tpu.dot_dimension_numbers<[1], [0], [0], [1], [0, 0, 1, 1], [], []>} : vector<4x16xf32>, vector<16x512xf32>, vector<4x512xf32> -> vector<4x512xf32>
    %230 = arith.addf %226, %229 : vector<4x512xf32>
    %c511_i32_150 = arith.constant 511 : i32
    %231 = tpu.dynamic_rotate %191 by %c511_i32_150 dim 1 : vector<16x512xf32>, i32 -> vector<16x512xf32>
    %c5_151 = arith.constant 5 : index
    %c0_152 = arith.constant 0 : index
    %c0_153 = arith.constant 0 : index
    %232 = vector.load %arg2[%c5_151, %c0_152, %c0_153] : memref<9x1x512xf32, #tpu.memory_space<vmem>>, vector<1x1x512xf32>
    %233 = vector.shape_cast %232 : vector<1x1x512xf32> to vector<1x512xf32>
    %234 = vector.broadcast %233 : vector<1x512xf32> to vector<16x512xf32>
    %235 = arith.mulf %231, %234 : vector<16x512xf32>
    %c5_154 = arith.constant 5 : index
    %c0_155 = arith.constant 0 : index
    %c0_156 = arith.constant 0 : index
    %236 = vector.load %arg10[%c5_154, %c0_155, %c0_156] : memref<9x4x16xf32, #tpu.memory_space<vmem>>, vector<1x4x16xf32>
    %237 = vector.shape_cast %236 : vector<1x4x16xf32> to vector<4x16xf32>
    %cst_157 = arith.constant dense<0.000000e+00> : vector<4x512xf32>
    %238 = tpu.matmul %237, %235, %cst_157 {dimension_numbers = #tpu.dot_dimension_numbers<[1], [0], [0], [1], [0, 0, 1, 1], [], []>} : vector<4x16xf32>, vector<16x512xf32>, vector<4x512xf32> -> vector<4x512xf32>
    %239 = arith.addf %230, %238 : vector<4x512xf32>
    %c497_i32_158 = arith.constant 497 : i32
    %240 = tpu.dynamic_rotate %191 by %c497_i32_158 dim 1 : vector<16x512xf32>, i32 -> vector<16x512xf32>
    %c6_159 = arith.constant 6 : index
    %c0_160 = arith.constant 0 : index
    %c0_161 = arith.constant 0 : index
    %241 = vector.load %arg2[%c6_159, %c0_160, %c0_161] : memref<9x1x512xf32, #tpu.memory_space<vmem>>, vector<1x1x512xf32>
    %242 = vector.shape_cast %241 : vector<1x1x512xf32> to vector<1x512xf32>
    %243 = vector.broadcast %242 : vector<1x512xf32> to vector<16x512xf32>
    %244 = arith.mulf %240, %243 : vector<16x512xf32>
    %c6_162 = arith.constant 6 : index
    %c0_163 = arith.constant 0 : index
    %c0_164 = arith.constant 0 : index
    %245 = vector.load %arg10[%c6_162, %c0_163, %c0_164] : memref<9x4x16xf32, #tpu.memory_space<vmem>>, vector<1x4x16xf32>
    %246 = vector.shape_cast %245 : vector<1x4x16xf32> to vector<4x16xf32>
    %cst_165 = arith.constant dense<0.000000e+00> : vector<4x512xf32>
    %247 = tpu.matmul %246, %244, %cst_165 {dimension_numbers = #tpu.dot_dimension_numbers<[1], [0], [0], [1], [0, 0, 1, 1], [], []>} : vector<4x16xf32>, vector<16x512xf32>, vector<4x512xf32> -> vector<4x512xf32>
    %248 = arith.addf %239, %247 : vector<4x512xf32>
    %c496_i32_166 = arith.constant 496 : i32
    %249 = tpu.dynamic_rotate %191 by %c496_i32_166 dim 1 : vector<16x512xf32>, i32 -> vector<16x512xf32>
    %c7_167 = arith.constant 7 : index
    %c0_168 = arith.constant 0 : index
    %c0_169 = arith.constant 0 : index
    %250 = vector.load %arg2[%c7_167, %c0_168, %c0_169] : memref<9x1x512xf32, #tpu.memory_space<vmem>>, vector<1x1x512xf32>
    %251 = vector.shape_cast %250 : vector<1x1x512xf32> to vector<1x512xf32>
    %252 = vector.broadcast %251 : vector<1x512xf32> to vector<16x512xf32>
    %253 = arith.mulf %249, %252 : vector<16x512xf32>
    %c7_170 = arith.constant 7 : index
    %c0_171 = arith.constant 0 : index
    %c0_172 = arith.constant 0 : index
    %254 = vector.load %arg10[%c7_170, %c0_171, %c0_172] : memref<9x4x16xf32, #tpu.memory_space<vmem>>, vector<1x4x16xf32>
    %255 = vector.shape_cast %254 : vector<1x4x16xf32> to vector<4x16xf32>
    %cst_173 = arith.constant dense<0.000000e+00> : vector<4x512xf32>
    %256 = tpu.matmul %255, %253, %cst_173 {dimension_numbers = #tpu.dot_dimension_numbers<[1], [0], [0], [1], [0, 0, 1, 1], [], []>} : vector<4x16xf32>, vector<16x512xf32>, vector<4x512xf32> -> vector<4x512xf32>
    %257 = arith.addf %248, %256 : vector<4x512xf32>
    %c495_i32_174 = arith.constant 495 : i32
    %258 = tpu.dynamic_rotate %191 by %c495_i32_174 dim 1 : vector<16x512xf32>, i32 -> vector<16x512xf32>
    %c8_175 = arith.constant 8 : index
    %c0_176 = arith.constant 0 : index
    %c0_177 = arith.constant 0 : index
    %259 = vector.load %arg2[%c8_175, %c0_176, %c0_177] : memref<9x1x512xf32, #tpu.memory_space<vmem>>, vector<1x1x512xf32>
    %260 = vector.shape_cast %259 : vector<1x1x512xf32> to vector<1x512xf32>
    %261 = vector.broadcast %260 : vector<1x512xf32> to vector<16x512xf32>
    %262 = arith.mulf %258, %261 : vector<16x512xf32>
    %c8_178 = arith.constant 8 : index
    %c0_179 = arith.constant 0 : index
    %c0_180 = arith.constant 0 : index
    %263 = vector.load %arg10[%c8_178, %c0_179, %c0_180] : memref<9x4x16xf32, #tpu.memory_space<vmem>>, vector<1x4x16xf32>
    %264 = vector.shape_cast %263 : vector<1x4x16xf32> to vector<4x16xf32>
    %cst_181 = arith.constant dense<0.000000e+00> : vector<4x512xf32>
    %265 = tpu.matmul %264, %262, %cst_181 {dimension_numbers = #tpu.dot_dimension_numbers<[1], [0], [0], [1], [0, 0, 1, 1], [], []>} : vector<4x16xf32>, vector<16x512xf32>, vector<4x512xf32> -> vector<4x512xf32>
    %266 = arith.addf %257, %265 : vector<4x512xf32>
    %c8_182 = arith.constant 8 : index
    %c0_183 = arith.constant 0 : index
    %267 = vector.load %arg11[%c8_182, %c0_183] : memref<12x512xf32, #tpu.memory_space<vmem>>, vector<4x512xf32>
    tpu.vector_store %arg11[%c8_182, %c0_183], %266 {strides = array<i32>} : memref<12x512xf32, #tpu.memory_space<vmem>>, vector<4x512xf32>,
    return
  }
  func.func @transform_0(%arg0: i32) -> (i32, i32) {
    %c0_i32 = arith.constant 0 : i32
    %c0_i32_0 = arith.constant 0 : i32
    %c0_i32_1 = arith.constant 0 : i32
    return %c0_i32, %c0_i32_0 : i32, i32
  }
  func.func @transform_1(%arg0: i32) -> (i32, i32, i32) {
    %c0_i32 = arith.constant 0 : i32
    %c0_i32_0 = arith.constant 0 : i32
    %c0_i32_1 = arith.constant 0 : i32
    %c0_i32_2 = arith.constant 0 : i32
    return %c0_i32, %c0_i32_0, %c0_i32_1 : i32, i32, i32
  }
  func.func @transform_2(%arg0: i32) -> (i32, i32, i32) {
    %c0_i32 = arith.constant 0 : i32
    %c0_i32_0 = arith.constant 0 : i32
    %c0_i32_1 = arith.constant 0 : i32
    %c0_i32_2 = arith.constant 0 : i32
    return %c0_i32, %c0_i32_0, %c0_i32_1 : i32, i32, i32
  }
  func.func @transform_3(%arg0: i32) -> (i32, i32, i32) {
    %c0_i32 = arith.constant 0 : i32
    %c0_i32_0 = arith.constant 0 : i32
    %c0_i32_1 = arith.constant 0 : i32
    %c0_i32_2 = arith.constant 0 : i32
    return %c0_i32, %c0_i32_0, %c0_i32_1 : i32, i32, i32
  }
  func.func @transform_4(%arg0: i32) -> (i32, i32) {
    %c0_i32 = arith.constant 0 : i32
    %c0_i32_0 = arith.constant 0 : i32
    %c0_i32_1 = arith.constant 0 : i32
    return %c0_i32, %c0_i32_0 : i32, i32
  }
  func.func @transform_5(%arg0: i32) -> (i32, i32, i32) {
    %c0_i32 = arith.constant 0 : i32
    %c0_i32_0 = arith.constant 0 : i32
    %c0_i32_1 = arith.constant 0 : i32
    %c0_i32_2 = arith.constant 0 : i32
    return %c0_i32, %c0_i32_0, %c0_i32_1 : i32, i32, i32
  }
  func.func @transform_6(%arg0: i32) -> (i32, i32, i32) {
    %c0_i32 = arith.constant 0 : i32
    %c0_i32_0 = arith.constant 0 : i32
    %c0_i32_1 = arith.constant 0 : i32
    %c0_i32_2 = arith.constant 0 : i32
    return %c0_i32, %c0_i32_0, %c0_i32_1 : i32, i32, i32
  }
  func.func @transform_7(%arg0: i32) -> (i32, i32, i32) {
    %c0_i32 = arith.constant 0 : i32
    %c0_i32_0 = arith.constant 0 : i32
    %c0_i32_1 = arith.constant 0 : i32
    %c0_i32_2 = arith.constant 0 : i32
    return %c0_i32, %c0_i32_0, %c0_i32_1 : i32, i32, i32
  }
  func.func @transform_8(%arg0: i32) -> (i32, i32) {
    %c0_i32 = arith.constant 0 : i32
    %c0_i32_0 = arith.constant 0 : i32
    %c0_i32_1 = arith.constant 0 : i32
    return %c0_i32, %c0_i32_0 : i32, i32
  }
  func.func @transform_9(%arg0: i32) -> (i32, i32, i32) {
    %c0_i32 = arith.constant 0 : i32
    %c0_i32_0 = arith.constant 0 : i32
    %c0_i32_1 = arith.constant 0 : i32
    %c0_i32_2 = arith.constant 0 : i32
    return %c0_i32, %c0_i32_0, %c0_i32_1 : i32, i32, i32
  }
  func.func @transform_10(%arg0: i32) -> (i32, i32) {
    %c0_i32 = arith.constant 0 : i32
    %c0_i32_0 = arith.constant 0 : i32
    %c0_i32_1 = arith.constant 0 : i32
    return %c0_i32, %c0_i32_0 : i32, i32
  }
}

</mosaic_0001>

<bundles_post_ra>
// kernel: dense_block_forward.1
= control target key start
LH: loop header
LB: loop body
LE: loop exit
PB: predicated region body
PF: predicated region fallthrough
CT: control target
= control target key end

     0   :  { %vm77_vm0 = vcmask 1043456   ;;  %v3105_v30 = vmov 0   ;;  %v3106_v50 = vmov 839922192   ;;  %vm164_vm4 = vcmask 31744   ;;  %s3107_s18 = smov 17   ;;  %s4379_s0 = inlined_call_operand.vmem [shape: f32[4,512], index: 0, kind: input, shape index: {}]   ;;  %s4380_s10 = inlined_call_operand.vmem [shape: f32[12,512], index: 10, kind: output, shape index: {}]   ;;  %s4381_s2 = inlined_call_operand.vmem [shape: f32[2,4,1], index: 2, kind: input, shape index: {}]   ;;  %s4382_s4 = inlined_call_operand.vmem [shape: f32[16,4], index: 4, kind: input, shape index: {}]   ;;  %s4383_s3 = inlined_call_operand.vmem [shape: f32[2,16,1], index: 3, kind: input, shape index: {}]   ;;  %s4384_s1 = inlined_call_operand.vmem [shape: f32[9,1,512], index: 1, kind: input, shape index: {}]   ;;  %s4385_s5 = inlined_call_operand.vmem [shape: f32[9,4,16], index: 5, kind: input, shape index: {}]   ;;  %s4386_s6 = inlined_call_operand.vmem [shape: f32[2,8,1], index: 6, kind: input, shape index: {}]   ;;  %s4387_s8 = inlined_call_operand.vmem [shape: f32[16,8], index: 8, kind: input, shape index: {}]   ;;  %s4388_s7 = inlined_call_operand.vmem [shape: f32[2,16,1], index: 7, kind: input, shape index: {}]   ;;  %s4389_s9 = inlined_call_operand.vmem [shape: f32[9,4,16], index: 9, kind: input, shape index: {}]  }
   0x1   :  { %v3173_v0 = vld [vmem:[%s4379_s0] sm:$0xff]  ;;  %v3178_v1 = vld [vmem:[%s4379_s0 + $0x8] sm:$0xff]  ;;  %3090 = vset.pattern.permute.xlu1 %v3105_v30  ;;  %3091 = vset.pattern.permute.xlu0 %v3105_v30  ;;  %v134_v51 = vunpack.c.l.s4 %v3106_v50  ;;  %s3109_s19 = smov 15   ;;  %s3110_s20 = smov 1  }
   0x2   :  { %39 = vst [vmem:[#allocation1] ss:$2 sm:$0xff] %v3173_v0  ;;  %v87_v6 = vmul.f32 %v3173_v0, %v3173_v0  ;;  %v88_v7 = vmul.f32 %v3178_v1, %v3178_v1  ;;  %3092 = vset.pattern.permute.xlu2 %v3105_v30  ;;  %v56_v43 = vld [vmem:[%s4381_s2] sm:$0xf]  ;;  %v2952_v48 = vld [vmem:[%s4381_s2 + $0x4] sm:$0xf] }
   0x3   :  { %41 = vst [vmem:[#allocation1 + $0x10] ss:$2 sm:$0xff] %v3178_v1  ;;  %v135_v53 = vunpack.c.0.s8 %v134_v51  ;;  %v153_v63 = vld [vmem:[%s4382_s4] sm:$0xff]  ;;  %s3111_s21 = smov 127   ;;  %s3112_s22 = smov 113  }
   0x4   :  { %s3113_s0 = smov 112   ;;  %s3114_s23 = smov 111  }
   0x9   :  { %v42_v2 = vld.sshfl [vmem:[#allocation1] sm:$0xff pattern:$0x75316420]  ;;  %v43_v3 = vld.sshfl [vmem:[#allocation1 + $0x8] sm:$0xff pattern:$0x75316420] }
   0xa   :  { %v44_v4 = vld.sshfl [vmem:[#allocation1 + $0x10] sm:$0xff pattern:$0x75316420]  ;;  %51 = vst [vmem:[%s4380_s10 + $0x8] sm:$0xf] %v43_v3 }
   0xb   :  { %v45_v5 = vld.sshfl [vmem:[#allocation1 + $0x18] sm:$0xff pattern:$0x75316420]  ;;  %52 = vst [vmem:[%s4380_s10 + $0x10] sm:$0xf] %v44_v4  ;;  %v154_v4 = vld [vmem:[%s4382_s4 + $0x8] sm:$0xff] }
   0xc   :  { %53 = vst [vmem:[%s4380_s10 + $0x18] sm:$0xf] %v45_v5 }
   0xd   :  { %66 = vst [vmem:[#allocation1] ss:$2 sm:$0xff] %v3173_v0 }
   0xe   :  { %68 = vst [vmem:[#allocation1 + $0x10] ss:$2 sm:$0xff] %v3178_v1 }
   0xf   :  { %50 = vst [vmem:[%s4380_s10] sm:$0xf] %v42_v2 }
  0x14   :  { %v69_v8 = vld.sshfl [vmem:[#allocation1] sm:$0xff pattern:$0x75316420]  ;;  %v70_v9 = vld.sshfl [vmem:[#allocation1 + $0x8] sm:$0xff pattern:$0x75316420] }
  0x15   :  { %v71_v10 = vld.sshfl [vmem:[#allocation1 + $0x10] sm:$0xff pattern:$0x75316420]  ;;  %v72_v11 = vld.sshfl [vmem:[#allocation1 + $0x18] sm:$0xff pattern:$0x75316420] }
  0x16   :  { %v78_v12 = vsel %vm77_vm0, %v69_v8, 0.0  ;;  %v79_v13 = vsel %vm77_vm0, %v70_v9, 0.0  ;;  %v81_v14 = vsel %vm77_vm0, %v71_v10, 0.0  ;;  %91 = vst [vmem:[#allocation1] ss:$2 sm:$0xff] %v87_v6  ;;  %v83_v16 = vsel %vm77_vm0, %v72_v11, 0.0 }
  0x17   :  { %v80_v15 = vadd.f32 %v79_v13, %v78_v12  ;;  %93 = vst [vmem:[#allocation1 + $0x10] ss:$2 sm:$0xff] %v88_v7 }
  0x19   :  { %v82_v17 = vadd.f32 %v81_v14, %v80_v15 }
  0x1b   :  { %v84_v18 = vadd.f32 %v83_v16, %v82_v17 }
  0x1d   :  { %85 = vadd.xlane.f32.xlu0 %v84_v18  ;;  %v94_v19 = vld.sshfl [vmem:[#allocation1] sm:$0xff pattern:$0x75316420]  ;;  %v95_v20 = vld.sshfl [vmem:[#allocation1 + $0x8] sm:$0xff pattern:$0x75316420] }
  0x1e   :  { %v96_v21 = vld.sshfl [vmem:[#allocation1 + $0x10] sm:$0xff pattern:$0x75316420]  ;;  %v97_v22 = vld.sshfl [vmem:[#allocation1 + $0x18] sm:$0xff pattern:$0x75316420] }
  0x1f   :  { %v102_v23 = vsel %vm77_vm0, %v94_v19, 0.0  ;;  %v103_v24 = vsel %vm77_vm0, %v95_v20, 0.0  ;;  %v105_v25 = vsel %vm77_vm0, %v96_v21, 0.0  ;;  %v107_v27 = vsel %vm77_vm0, %v97_v22, 0.0 }
  0x20   :  { %v104_v26 = vadd.f32 %v103_v24, %v102_v23 }
  0x22   :  { %v106_v28 = vadd.f32 %v105_v25, %v104_v26 }
  0x24   :  { %v108_v29 = vadd.f32 %v107_v27, %v106_v28 }
  0x26   :  { %109 = vadd.xlane.f32.xlu0 %v108_v29 }
  0x90   :  { %v86_v31 = vpop.xlane.xlu0 %85 }
  0x91   :  { %v111_v32 = vmul.f32 0.001953125, %v86_v31 }
  0x93   :  { %v113_v34 = vmul.f32 %v111_v32, %v111_v32 }
  0x99   :  { %v110_v33 = vpop.xlane.xlu0 %109 }
  0x9a   :  { %v112_v35 = vmul.f32 0.001953125, %v110_v33 }
  0x9c   :  { %v114_v36 = vsub.f32 %v112_v35, %v113_v34 }
  0x9e   :  { %v115_v37 = vadd.f32 1.1e-05, %v114_v36 }
  0xa0   :  { %3093 = vrsqrt.f32 %v115_v37  ;;  %vm122_vm2 = vweird.f32 %v115_v37 }
  0xa6   :  { %v3094_v38 = vpop.eup %3093 }
  0xa7   :  { %v117_v39 = vmul.f32 %v3094_v38, %v115_v37  ;;  %vm123_vm1 = vweird.f32 %v3094_v38 }
  0xa8   :  { %vm124_vm3 = vmor %vm122_vm2, %vm123_vm1  ;;  %vm471_vm2 = vcmask 130048  }
  0xa9   :  { %v118_v40 = vmul.f32 %v3094_v38, %v117_v39 }
  0xab   :  { %v119_v41 = vmul.f32 0.5, %v118_v40 }
  0xad   :  { %v120_v42 = vsub.f32 1.5, %v119_v41 }
  0xaf   :  { %v121_v44 = vmul.f32 %v3094_v38, %v120_v42 }
  0xb1   :  { %v125_v45 = vsel %vm124_vm3, %v3094_v38, %v121_v44 }
  0xb2   :  { %v126_v46 = vmul.f32 %v125_v45, %v56_v43 }
  0xb4   :  { %131 = vperm.xlu1 %3090, %v126_v46   ;;  %v127_v47 = vmul.f32 %v126_v46, %v111_v32 }
  0xb6   :  { %v128_v49 = vsub.f32 %v2952_v48, %v127_v47 }
  0xbc   :  { %142 = vperm.xlu1 %3090, %v128_v49  }
 0x126   :  { %v132_v52 = vpop.permute.xlu1 %131 }
 0x127   :  { %v136_v54 = vperm.slane %v132_v52, %v135_v53 }
 0x129   :  { %v138_v56 = vmul.f32 %v136_v54, %v3173_v0  ;;  %v139_v57 = vmul.f32 %v136_v54, %v3178_v1  ;;  %v59_v54 = vld [vmem:[%s4383_s3] sm:$0xff] }
 0x12e   :  { %v143_v55 = vpop.permute.xlu1 %142 }
 0x12f   :  { %v147_v58 = vperm.slane %v143_v55, %v135_v53 }
 0x131   :  { %v149_v59 = vadd.f32 %v147_v58, %v138_v56  ;;  %v150_v60 = vadd.f32 %v147_v58, %v139_v57 }
 0x133   :  { %v151_v61 = vmax.f32 %v149_v59, 0.0  ;;  %v152_v62 = vmax.f32 %v150_v60, 0.0  ;;  %v2953_v60 = vld [vmem:[%s4383_s3 + $0x10] sm:$0xff] }
 0x135   :  { %157 = vst [vmem:[#allocation1] ss:$2 sm:$0xff] %v151_v61 }
 0x136   :  { %159 = vst [vmem:[#allocation1 + $0x10] ss:$2 sm:$0xff] %v152_v62 }
 0x13c   :  { %v160_v2 = vld.sshfl [vmem:[#allocation1] sm:$0xff pattern:$0x75316420]  ;;  %v161_v3 = vld.sshfl [vmem:[#allocation1 + $0x8] sm:$0xff pattern:$0x75316420] }
 0x13d   :  { %2955 = vmatpush.msk.msra.mxu0 %vm77_vm0, %v160_v2  ;;  %2958 = vmatpush.msk.msra.mxu1 %vm77_vm0, %v161_v3  ;;  %v162_v0 = vld.sshfl [vmem:[#allocation1 + $0x10] sm:$0xff pattern:$0x75316420]  ;;  %v163_v1 = vld.sshfl [vmem:[#allocation1 + $0x18] sm:$0xff pattern:$0x75316420] }
 0x13e   :  { %2961 = vmatpush.msk.msra.mxu2 %vm77_vm0, %v162_v0  ;;  %2964 = vmatpush.msk.msra.mxu3 %vm77_vm0, %v163_v1  ;;  %v60_v3 = vld [vmem:[%s4383_s3 + $0x8] sm:$0xff] }
 0x13f   :  { %2962 = vmatmul.msk.f32.vlgmr.msra.gmra.mxu2 %vm164_vm4, %v153_v63  ;;  %2965 = vmatmul.msk.f32.vlgmr.msra.gmra.mxu3 %vm164_vm4, %v153_v63 }
 0x140   :  { %2956 = vmatmul.msk.f32.vlgmr.msra.gmra.mxu0 %vm164_vm4, %v153_v63  ;;  %2959 = vmatmul.msk.f32.vlgmr.msra.gmra.mxu1 %vm164_vm4, %v153_v63 }
 0x147   :  { %2963 = vmatmul.msk.f32.gmra.mxu2 %vm164_vm4, %v154_v4  ;;  %2966 = vmatmul.msk.f32.gmra.mxu3 %vm164_vm4, %v154_v4 }
 0x148   :  { %2957 = vmatmul.msk.f32.gmra.mxu0 %vm164_vm4, %v154_v4  ;;  %2960 = vmatmul.msk.f32.gmra.mxu1 %vm164_vm4, %v154_v4 }
 0x1bd   :  { %v3234_v5 = vpop.f32.mrf.mxu0  ;;  %v3236_v6 = vpop.f32.mrf.mxu1 }
 0x1be   :  { %v281_v7 = vmul.f32 %v3234_v5, %v3234_v5  ;;  %v282_v8 = vmul.f32 %v3236_v6, %v3236_v6  ;;  %v271_v9 = vadd.f32 %v3236_v6, %v3234_v5 }
 0x1c0   :  { %v289_v10 = vadd.f32 %v282_v8, %v281_v7  ;;  %v2954_v7 = vld [vmem:[%s4383_s3 + $0x18] sm:$0xff]  ;;  %s3108_s3 = smov 16  }
 0x1c2   :  { %v3244_v11 = vpop.f32.mrf.mxu2  ;;  %v3246_v12 = vpop.f32.mrf.mxu3 }
 0x1c3   :  { %v283_v13 = vmul.f32 %v3244_v11, %v3244_v11  ;;  %v272_v14 = vadd.f32 %v271_v9, %v3244_v11  ;;  %v284_v15 = vmul.f32 %v3246_v12, %v3246_v12 }
 0x1c5   :  { %v273_v16 = vadd.f32 %v272_v14, %v3246_v12  ;;  %v290_v17 = vadd.f32 %v289_v10, %v283_v13  ;;  %v3254_v18 = vpop.f32.mrf.mxu0  ;;  %v3256_v19 = vpop.f32.mrf.mxu1 }
 0x1c6   :  { %v285_v20 = vmul.f32 %v3254_v18, %v3254_v18  ;;  %v286_v21 = vmul.f32 %v3256_v19, %v3256_v19  ;;  %v276_v23 = vadd.f32 %v3256_v19, %v3254_v18 }
 0x1c7   :  { %274 = vadd.xlane.f32.xlu2 %v273_v16  ;;  %v291_v22 = vadd.f32 %v290_v17, %v284_v15 }
 0x1c8   :  { %v294_v24 = vadd.f32 %v286_v21, %v285_v20 }
 0x1c9   :  { %292 = vadd.xlane.f32.xlu1 %v291_v22 }
 0x1ca   :  { %v3264_v25 = vpop.f32.mrf.mxu2  ;;  %v3266_v26 = vpop.f32.mrf.mxu3 }
 0x1cb   :  { %v287_v27 = vmul.f32 %v3264_v25, %v3264_v25  ;;  %v277_v28 = vadd.f32 %v276_v23, %v3264_v25  ;;  %v288_v29 = vmul.f32 %v3266_v26, %v3266_v26 }
 0x1cd   :  { %v278_v30 = vadd.f32 %v277_v28, %v3266_v26  ;;  %v295_v31 = vadd.f32 %v294_v24, %v287_v27 }
 0x1cf   :  { %279 = vadd.xlane.f32.xlu2 %v278_v30  ;;  %v296_v32 = vadd.f32 %v295_v31, %v288_v29 }
 0x1d1   :  { %297 = vadd.xlane.f32.xlu0 %v296_v32 }
 0x23a   :  { %v275_v33 = vpop.xlane.xlu2 %274 }
 0x23b   :  { %v299_v34 = vmul.f32 0.001953125, %v275_v33 }
 0x23c   :  { %v293_v35 = vpop.xlane.xlu1 %292 }
 0x23d   :  { %v303_v36 = vmul.f32 %v299_v34, %v299_v34  ;;  %v301_v37 = vmul.f32 0.001953125, %v293_v35 }
 0x23f   :  { %v305_v38 = vsub.f32 %v301_v37, %v303_v36  ;;  %v395_v37 = vlaneseq }
 0x241   :  { %v307_v39 = vadd.f32 1.1e-05, %v305_v38 }
 0x242   :  { %v280_v40 = vpop.xlane.xlu2 %279 }
 0x243   :  { %3095 = vrsqrt.f32 %v307_v39  ;;  %v300_v41 = vmul.f32 0.001953125, %v280_v40  ;;  %vm315_vm6 = vweird.f32 %v307_v39 }
 0x244   :  { %v298_v42 = vpop.xlane.xlu0 %297 }
 0x245   :  { %v304_v43 = vmul.f32 %v300_v41, %v300_v41  ;;  %v302_v44 = vmul.f32 0.001953125, %v298_v42 }
 0x247   :  { %v306_v45 = vsub.f32 %v302_v44, %v304_v43 }
 0x249   :  { %v3096_v46 = vpop.eup %3095  ;;  %v308_v47 = vadd.f32 1.1e-05, %v306_v45 }
 0x24a   :  { %v310_v48 = vmul.f32 %v3096_v46, %v307_v39  ;;  %vm316_vm5 = vweird.f32 %v3096_v46  ;;  %v3394_v39 = vand.u32 127, %v395_v37 }
 0x24b   :  { %3097 = vrsqrt.f32 %v308_v47  ;;  %vm317_vm7 = vmor %vm315_vm6, %vm316_vm5  ;;  %vm325_vm8 = vweird.f32 %v308_v47 }
 0x24c   :  { %v311_v49 = vmul.f32 %v3096_v46, %v310_v48  ;;  %vm397_vm11 = vcmp.lt.s32.totalorder %v3394_v39, 17  ;;  %vm441_vm12 = vcmp.lt.s32.totalorder %v3394_v39, 16  ;;  %vm654_vm13 = vcmp.lt.s32.totalorder %v3394_v39, 15 }
 0x24d   :  { %vm787_vm14 = vcmp.lt.s32.totalorder %v3394_v39, 1  ;;  %vm1142_vm15 = vcmp.lt.s32.totalorder %v3394_v39, 113  ;;  %vm1009_vm0 = vcmp.lt.s32.totalorder %v3394_v39, 127  ;;  %vm1275_vm1 = vcmp.lt.s32.totalorder %v3394_v39, 112 }
 0x24e   :  { %v312_v50 = vmul.f32 0.5, %v311_v49  ;;  %vm1408_vm3 = vcmp.lt.s32.totalorder %v3394_v39, 111 }
 0x250   :  { %v313_v51 = vsub.f32 1.5, %v312_v50 }
 0x251   :  { %v3098_v52 = vpop.eup %3097 }
 0x252   :  { %v320_v53 = vmul.f32 %v3098_v52, %v308_v47  ;;  %v314_v55 = vmul.f32 %v3096_v46, %v313_v51  ;;  %vm326_vm9 = vweird.f32 %v3098_v52 }
 0x253   :  { %vm327_vm10 = vmor %vm325_vm8, %vm326_vm9 }
 0x254   :  { %v321_v56 = vmul.f32 %v3098_v52, %v320_v53  ;;  %v318_v57 = vsel %vm317_vm7, %v3096_v46, %v314_v55  ;;  %vm1609_vm7 = vcmask 64512  }
 0x255   :  { %v329_v58 = vmul.f32 %v318_v57, %v59_v54 }
 0x256   :  { %v322_v59 = vmul.f32 0.5, %v321_v56 }
 0x257   :  { %337 = vperm.xlu0 %3091, %v329_v58   ;;  %v331_v61 = vmul.f32 %v329_v58, %v299_v34 }
 0x258   :  { %v323_v62 = vsub.f32 1.5, %v322_v59 }
 0x259   :  { %v333_v63 = vsub.f32 %v2953_v60, %v331_v61 }
 0x25a   :  { %v324_v2 = vmul.f32 %v3098_v52, %v323_v62 }
 0x25b   :  { %355 = vperm.xlu2 %3092, %v333_v63  }
 0x25c   :  { %v328_v0 = vsel %vm327_vm10, %v3098_v52, %v324_v2 }
 0x25d   :  { %v330_v1 = vmul.f32 %v328_v0, %v60_v3 }
 0x25f   :  { %v332_v4 = vmul.f32 %v330_v1, %v300_v41 }
 0x261   :  { %v334_v8 = vsub.f32 %v2954_v7, %v332_v4 }
 0x263   :  { %342 = vperm.xlu2 %3092, %v330_v1  }
 0x26b   :  { %360 = vperm.xlu2 %3092, %v334_v8  }
 0x2b5   :  { %v356_v14 = vpop.permute.xlu2 %355 }
 0x2bd   :  { %v343_v23 = vpop.permute.xlu2 %342 }
 0x2be   :  { %v351_v27 = vmul.f32 %v343_v23, %v3264_v25  ;;  %v350_v30 = vmul.f32 %v343_v23, %v3256_v19  ;;  %v349_v32 = vmul.f32 %v343_v23, %v3254_v18  ;;  %v352_v19 = vmul.f32 %v343_v23, %v3266_v26 }
 0x2c5   :  { %v361_v24 = vpop.permute.xlu2 %360 }
 0x2c6   :  { %v369_v28 = vadd.f32 %v361_v24, %v351_v27  ;;  %v368_v25 = vadd.f32 %v361_v24, %v350_v30  ;;  %v367_v33 = vadd.f32 %v361_v24, %v349_v32  ;;  %v370_v34 = vadd.f32 %v361_v24, %v352_v19  ;;  %v2967_v19 = vld [vmem:[%s4384_s1 + $0x4] sm:$0xf] }
 0x2c8   :  { %v3353_v29 = vmax.f32 %v369_v28, 0.0  ;;  %v3362_v31 = vmax.f32 %v368_v25, 0.0  ;;  %v3372_v35 = vmax.f32 %v367_v33, 0.0  ;;  %v3374_v36 = vmax.f32 %v370_v34, 0.0 }
 0x2c9   :  { %v338_v9 = vpop.permute.xlu0 %337 }
 0x2ca   :  { %v346_v10 = vmul.f32 %v338_v9, %v3236_v6  ;;  %v347_v13 = vmul.f32 %v338_v9, %v3244_v11  ;;  %v345_v17 = vmul.f32 %v338_v9, %v3234_v5  ;;  %v348_v20 = vmul.f32 %v338_v9, %v3246_v12 }
 0x2cc   :  { %v364_v15 = vadd.f32 %v356_v14, %v346_v10  ;;  %v365_v16 = vadd.f32 %v356_v14, %v347_v13  ;;  %v363_v6 = vadd.f32 %v356_v14, %v345_v17  ;;  %v366_v11 = vadd.f32 %v356_v14, %v348_v20 }
 0x2ce   :  { %v3290_v21 = vmax.f32 %v364_v15, 0.0  ;;  %v3292_v22 = vmax.f32 %v365_v16, 0.0  ;;  %v3300_v5 = vmax.f32 %v363_v6, 0.0  ;;  %v3302_v12 = vmax.f32 %v366_v11, 0.0 }
 0x2d0   :  { %387 = vrot.lane.b32.xlu1 %v3292_v22, %s3107_s18  ;;  %433 = vrot.lane.b32.xlu2 %v3292_v22, %s3108_s3 }
 0x2d1   :  { %429 = vrot.lane.b32.xlu0 %v3290_v21, %s3108_s3 }
 0x2d8   :  { %391 = vrot.lane.b32.xlu1 %v3302_v12, %s3107_s18  ;;  %425 = vrot.lane.b32.xlu2 %v3300_v5, %s3108_s3 }
 0x2d9   :  { %437 = vrot.lane.b32.xlu0 %v3302_v12, %s3108_s3 }
 0x2e0   :  { %638 = vrot.lane.b32.xlu1 %v3300_v5, %s3109_s19  ;;  %383 = vrot.lane.b32.xlu2 %v3290_v21, %s3107_s18 }
 0x2e1   :  { %379 = vrot.lane.b32.xlu0 %v3300_v5, %s3107_s18 }
 0x2e8   :  { %775 = vrot.lane.b32.xlu1 %v3290_v21, %s3110_s20  ;;  %646 = vrot.lane.b32.xlu2 %v3292_v22, %s3109_s19 }
 0x2e9   :  { %642 = vrot.lane.b32.xlu0 %v3290_v21, %s3109_s19 }
 0x2f0   :  { %1001 = vrot.lane.b32.xlu1 %v3292_v22, %s3111_s21  ;;  %650 = vrot.lane.b32.xlu2 %v3302_v12, %s3109_s19 }
 0x2f1   :  { %779 = vrot.lane.b32.xlu0 %v3292_v22, %s3110_s20 }
 0x2f8   :  { %1138 = vrot.lane.b32.xlu1 %v3302_v12, %s3112_s22  ;;  %771 = vrot.lane.b32.xlu2 %v3300_v5, %s3110_s20 }
 0x2f9   :  { %783 = vrot.lane.b32.xlu0 %v3302_v12, %s3110_s20 }
 0x300   :  { %1130 = vrot.lane.b32.xlu1 %v3290_v21, %s3112_s22  ;;  %993 = vrot.lane.b32.xlu2 %v3300_v5, %s3111_s21 }
 0x301   :  { %1005 = vrot.lane.b32.xlu0 %v3302_v12, %s3111_s21 }
 0x308   :  { %1259 = vrot.lane.b32.xlu1 %v3300_v5, %s3113_s0  ;;  %1134 = vrot.lane.b32.xlu2 %v3292_v22, %s3112_s22 }
 0x309   :  { %997 = vrot.lane.b32.xlu0 %v3290_v21, %s3111_s21 }
 0x310   :  { %1400 = vrot.lane.b32.xlu1 %v3292_v22, %s3114_s23  ;;  %1271 = vrot.lane.b32.xlu2 %v3302_v12, %s3113_s0 }
 0x311   :  { %1126 = vrot.lane.b32.xlu0 %v3300_v5, %s3112_s22 }
 0x318   :  { %1263 = vrot.lane.b32.xlu2 %v3290_v21, %s3113_s0  ;;  %435 = vrot.lane.b32.xlu1 %v3353_v29, %s3108_s3 }
 0x319   :  { %1267 = vrot.lane.b32.xlu0 %v3292_v22, %s3113_s0 }
 0x320   :  { %385 = vrot.lane.b32.xlu1 %v3362_v31, %s3107_s18  ;;  %431 = vrot.lane.b32.xlu2 %v3362_v31, %s3108_s3 }
 0x321   :  { %1404 = vrot.lane.b32.xlu0 %v3302_v12, %s3114_s23 }
 0x328   :  { %648 = vrot.lane.b32.xlu1 %v3353_v29, %s3109_s19  ;;  %427 = vrot.lane.b32.xlu2 %v3372_v35, %s3108_s3 }
 0x329   :  { %439 = vrot.lane.b32.xlu0 %v3374_v36, %s3108_s3 }
 0x32a   :  { %v434_v18 = vpop.permute.xlu2 %433 }
 0x330   :  { %652 = vrot.lane.b32.xlu1 %v3374_v36, %s3109_s19  ;;  %381 = vrot.lane.b32.xlu2 %v3372_v35, %s3107_s18 }
 0x331   :  { %389 = vrot.lane.b32.xlu0 %v3353_v29, %s3107_s18 }
 0x332   :  { %v426_v26 = vpop.permute.xlu2 %425 }
 0x338   :  { %773 = vrot.lane.b32.xlu1 %v3372_v35, %s3110_s20  ;;  %644 = vrot.lane.b32.xlu2 %v3362_v31, %s3109_s19 }
 0x339   :  { %393 = vrot.lane.b32.xlu0 %v3374_v36, %s3107_s18 }
 0x33a   :  { %v384_v38 = vpop.permute.xlu2 %383 }
 0x340   :  { %1003 = vrot.lane.b32.xlu1 %v3353_v29, %s3111_s21  ;;  %781 = vrot.lane.b32.xlu2 %v3353_v29, %s3110_s20 }
 0x341   :  { %640 = vrot.lane.b32.xlu0 %v3372_v35, %s3109_s19 }
 0x342   :  { %v388_v40 = vpop.permute.xlu1 %387  ;;  %v647_v41 = vpop.permute.xlu2 %646 }
 0x343   :  { %v3406_v42 = vsel %vm397_vm11, %v384_v38, %v388_v40  ;;  %v430_v43 = vpop.permute.xlu0 %429 }
 0x344   :  { %v3410_v44 = vsel %vm441_vm12, %v430_v43, %v434_v18  ;;  %v3414_v45 = vsel %vm441_vm12, %v426_v26, %v430_v43 }
 0x348   :  { %999 = vrot.lane.b32.xlu1 %v3362_v31, %s3111_s21  ;;  %785 = vrot.lane.b32.xlu2 %v3374_v36, %s3110_s20 }
 0x349   :  { %777 = vrot.lane.b32.xlu0 %v3362_v31, %s3110_s20 }
 0x34a   :  { %v392_v46 = vpop.permute.xlu1 %391  ;;  %v651_v47 = vpop.permute.xlu2 %650 }
 0x34b   :  { %v3425_v48 = vsel %vm397_vm11, %v388_v40, %v392_v46  ;;  %v438_v49 = vpop.permute.xlu0 %437  ;;  %v3429_v50 = vsel %vm654_vm13, %v647_v41, %v651_v47 }
 0x34c   :  { %v3433_v51 = vsel %vm441_vm12, %v434_v18, %v438_v49  ;;  %v3437_v52 = vsel %vm441_vm12, %v438_v49, %v426_v26  ;;  %v454_v18 = vperm.slane %v2967_v19, 1 }
 0x34e   :  { %v462_v43 = vmul.f32 %v454_v18, %v3414_v45 }
 0x350   :  { %1140 = vrot.lane.b32.xlu1 %v3374_v36, %s3112_s22  ;;  %995 = vrot.lane.b32.xlu2 %v3372_v35, %s3111_s21 }
 0x351   :  { %1007 = vrot.lane.b32.xlu0 %v3374_v36, %s3111_s21 }
 0x352   :  { %v639_v53 = vpop.permute.xlu1 %638  ;;  %v772_v54 = vpop.permute.xlu2 %771 }
 0x353   :  { %v3447_v55 = vsel %vm654_vm13, %v651_v47, %v639_v53  ;;  %v380_v56 = vpop.permute.xlu0 %379 }
 0x354   :  { %v3451_v57 = vsel %vm397_vm11, %v380_v56, %v384_v38  ;;  %v3455_v58 = vsel %vm397_vm11, %v392_v46, %v380_v56  ;;  %v2968_v46 = vld [vmem:[%s4385_s5 + $0x4] sm:$0xf] }
 0x358   :  { %1261 = vrot.lane.b32.xlu1 %v3372_v35, %s3113_s0  ;;  %1136 = vrot.lane.b32.xlu2 %v3353_v29, %s3112_s22 }
 0x359   :  { %1128 = vrot.lane.b32.xlu0 %v3372_v35, %s3112_s22 }
 0x35a   :  { %v776_v59 = vpop.permute.xlu1 %775  ;;  %v994_v60 = vpop.permute.xlu2 %993 }
 0x35b   :  { %v3466_v61 = vsel %vm787_vm14, %v772_v54, %v776_v59  ;;  %v643_v62 = vpop.permute.xlu0 %642 }
 0x35c   :  { %v3470_v63 = vsel %vm654_vm13, %v643_v62, %v647_v41  ;;  %v3474_v2 = vsel %vm654_vm13, %v639_v53, %v643_v62  ;;  %v455_v53 = vperm.slane %v2967_v19, 2 }
 0x35e   :  { %v463_v62 = vmul.f32 %v455_v53, %v3410_v44  ;;  %v424_v44 = vld [vmem:[%s4385_s5] sm:$0xf] }
 0x360   :  { %1402 = vrot.lane.b32.xlu1 %v3353_v29, %s3114_s23  ;;  %1132 = vrot.lane.b32.xlu2 %v3362_v31, %s3112_s22 }
 0x361   :  { %1269 = vrot.lane.b32.xlu0 %v3353_v29, %s3113_s0 }
 0x362   :  { %v1002_v3 = vpop.permute.xlu1 %1001  ;;  %v1135_v0 = vpop.permute.xlu2 %1134 }
 0x363   :  { %v780_v1 = vpop.permute.xlu0 %779 }
 0x364   :  { %v3484_v4 = vsel %vm787_vm14, %v776_v59, %v780_v1 }
 0x368   :  { %1398 = vrot.lane.b32.xlu1 %v3362_v31, %s3114_s23  ;;  %1273 = vrot.lane.b32.xlu2 %v3374_v36, %s3113_s0 }
 0x369   :  { %1265 = vrot.lane.b32.xlu0 %v3362_v31, %s3113_s0 }
 0x36a   :  { %v1139_v7 = vpop.permute.xlu1 %1138  ;;  %v1272_v8 = vpop.permute.xlu2 %1271 }
 0x36b   :  { %v3495_v9 = vsel %vm1142_vm15, %v1135_v0, %v1139_v7  ;;  %v784_v10 = vpop.permute.xlu0 %783 }
 0x36c   :  { %v3499_v13 = vsel %vm787_vm14, %v780_v1, %v784_v10  ;;  %v3503_v14 = vsel %vm787_vm14, %v784_v10, %v772_v54 }
 0x370   :  { %1394 = vrot.lane.b32.xlu2 %v3372_v35, %s3114_s23 }
 0x371   :  { %1406 = vrot.lane.b32.xlu0 %v3374_v36, %s3114_s23 }
 0x372   :  { %v1131_v15 = vpop.permute.xlu1 %1130  ;;  %v1264_v16 = vpop.permute.xlu2 %1263 }
 0x373   :  { %v3512_v17 = vsel %vm1142_vm15, %v1131_v15, %v1135_v0  ;;  %v1006_v20 = vpop.permute.xlu0 %1005 }
 0x374   :  { %v3516_v6 = vsel %vm1009_vm0, %v1002_v3, %v1006_v20  ;;  %v3520_v11 = vsel %vm1009_vm0, %v1006_v20, %v994_v60 }
 0x378   :  { %1392 = vrot.lane.b32.xlu2 %v3300_v5, %s3114_s23 }
 0x379   :  { %1396 = vrot.lane.b32.xlu0 %v3290_v21, %s3114_s23 }
 0x37a   :  { %v1260_v23 = vpop.permute.xlu1 %1259  ;;  %v432_v24 = vpop.permute.xlu2 %431 }
 0x37b   :  { %v3529_v27 = vsel %vm1275_vm1, %v1260_v23, %v1264_v16  ;;  %v3533_v28 = vsel %vm1275_vm1, %v1272_v8, %v1260_v23  ;;  %v998_v30 = vpop.permute.xlu0 %997 }
 0x37c   :  { %v3537_v25 = vsel %vm1009_vm0, %v998_v30, %v1002_v3  ;;  %v3541_v32 = vsel %vm1009_vm0, %v994_v60, %v998_v30  ;;  %v406_v3 = vld [vmem:[%s4384_s1] sm:$0xf]  ;;  %v453_v30 = vperm.slane %v2967_v19, 0 }
 0x37d   :  { %v409_v0 = vperm.slane %v406_v3, 1 }
 0x382   :  { %v3546_v33 = vpop.permute.xlu1 %1400  ;;  %v428_v34 = vpop.permute.xlu2 %427 }
 0x383   :  { %v1127_v26 = vpop.permute.xlu0 %1126  ;;  %v447_v37 = vsel %vm441_vm12, %v428_v34, %v432_v24 }
 0x384   :  { %v3552_v38 = vsel %vm1142_vm15, %v1127_v26, %v1131_v15  ;;  %v3556_v40 = vsel %vm1142_vm15, %v1139_v7, %v1127_v26  ;;  %v466_v41 = vmul.f32 %v454_v18, %v447_v37  ;;  %v456_v18 = vperm.slane %v2967_v19, 3 }
 0x385   :  { %v410_v19 = vperm.slane %v406_v3, 2 }
 0x386   :  { %509 = vmatpush.msrb.mxu1 %v466_v41 }
 0x388   :  { %510 = vmatpush.msrb.mxu1 %v462_v43  ;;  %v461_v43 = vmul.f32 %v453_v30, %v3437_v52  ;;  %v2977_v52 = vld [vmem:[%s4384_s1 + $0x8] sm:$0xf] }
 0x389   :  { %2970 = vmatmul.msk.f32.vlgmr.msrb.gmra.mxu1 %vm471_vm2, %v2968_v46 }
 0x38a   :  { %v436_v47 = vpop.permute.xlu1 %435  ;;  %v382_v49 = vpop.permute.xlu2 %381 }
 0x38b   :  { %v1268_v54 = vpop.permute.xlu0 %1267  ;;  %v445_v56 = vsel %vm441_vm12, %v432_v24, %v436_v47 }
 0x38c   :  { %v3567_v59 = vsel %vm1275_vm1, %v1268_v54, %v1272_v8  ;;  %v3571_v45 = vsel %vm1275_vm1, %v1264_v16, %v1268_v54  ;;  %v467_v60 = vmul.f32 %v455_v53, %v445_v56  ;;  %v417_v16 = vmul.f32 %v409_v0, %v3451_v57 }
 0x38d   :  { %v464_v53 = vmul.f32 %v456_v18, %v3433_v51 }
 0x38e   :  { %529 = vmatpush.msrb.mxu2 %v467_v60 }
 0x390   :  { %530 = vmatpush.msrb.mxu2 %v463_v62  ;;  %v418_v62 = vmul.f32 %v410_v19, %v3406_v42 }
 0x391   :  { %2971 = vmatmul.msk.f32.vlgmr.msrb.gmra.mxu2 %vm471_vm2, %v2968_v46 }
 0x392   :  { %v386_v1 = vpop.permute.xlu1 %385  ;;  %v3578_v7 = vpop.permute.xlu2 %644 }
 0x393   :  { %v3580_v8 = vpop.permute.xlu0 %1404  ;;  %v403_v10 = vsel %vm397_vm11, %v382_v49, %v386_v1 }
 0x394   :  { %v421_v15 = vmul.f32 %v409_v0, %v403_v10  ;;  %v668_v0 = vperm.slane %v2977_v52, 2 }
 0x396   :  { %592 = vmatpush.msra.mxu1 %v421_v15  ;;  %v408_v15 = vperm.slane %v406_v3, 0 }
 0x398   :  { %593 = vmatpush.msra.mxu1 %v417_v16  ;;  %v676_v16 = vmul.f32 %v668_v0, %v3470_v63 }
 0x399   :  { %2974 = vmatmul.msk.f32.vlgmr.msra.gmra.mxu1 %vm471_vm2, %v424_v44 }
 0x39a   :  { %v649_v20 = vpop.permute.xlu1 %648  ;;  %v3589_v24 = vpop.permute.xlu2 %781 }
 0x39b   :  { %v440_v23 = vpop.permute.xlu0 %439  ;;  %v658_v51 = vsel %vm654_vm13, %v3578_v7, %v649_v20 }
 0x39c   :  { %v443_v26 = vsel %vm441_vm12, %v436_v47, %v440_v23  ;;  %v449_v57 = vsel %vm441_vm12, %v440_v23, %v428_v34 }
 0x39d   :  { %v465_v37 = vmul.f32 %v453_v30, %v449_v57  ;;  %v468_v41 = vmul.f32 %v456_v18, %v443_v26 }
 0x39f   :  { %489 = vmatpush.msrb.mxu0 %v465_v37  ;;  %549 = vmatpush.msrb.mxu3 %v468_v41  ;;  %v669_v41 = vperm.slane %v2977_v52, 3 }
 0x3a1   :  { %490 = vmatpush.msrb.mxu0 %v461_v43  ;;  %550 = vmatpush.msrb.mxu3 %v464_v53  ;;  %v2978_v43 = vld [vmem:[%s4385_s5 + $0x8] sm:$0xf] }
 0x3a2   :  { %v653_v54 = vpop.permute.xlu1 %652  ;;  %2969 = vmatmul.msk.f32.vlgmr.msrb.gmra.mxu0 %vm471_vm2, %v2968_v46  ;;  %2972 = vmatmul.msk.f32.vlgmr.msrb.gmra.mxu3 %vm471_vm2, %v2968_v46  ;;  %v786_v60 = vpop.permute.xlu2 %785  ;;  %v680_v46 = vmul.f32 %v668_v0, %v658_v51 }
 0x3a3   :  { %v390_v47 = vpop.permute.xlu0 %389  ;;  %v656_v57 = vsel %vm654_vm13, %v649_v20, %v653_v54 }
 0x3a4   :  { %v401_v34 = vsel %vm397_vm11, %v386_v1, %v390_v47  ;;  %v411_v1 = vperm.slane %v406_v3, 3  ;;  %v416_v3 = vmul.f32 %v408_v15, %v3455_v58  ;;  %v681_v53 = vmul.f32 %v669_v41, %v656_v57 }
 0x3a5   :  { %v422_v56 = vmul.f32 %v410_v19, %v401_v34  ;;  %v677_v19 = vmul.f32 %v669_v41, %v3429_v50  ;;  %v667_v34 = vperm.slane %v2977_v52, 1 }
 0x3a6   :  { %v419_v37 = vmul.f32 %v411_v1, %v3425_v48  ;;  %v789_v48 = vsel %vm787_vm14, %v3589_v24, %v786_v60 }
 0x3a7   :  { %612 = vmatpush.msra.mxu2 %v422_v56 }
 0x3a9   :  { %613 = vmatpush.msra.mxu2 %v418_v62 }
 0x3aa   :  { %2975 = vmatmul.msk.f32.vlgmr.msra.gmra.mxu2 %vm471_vm2, %v424_v44  ;;  %v3609_v10 = vpop.permute.xlu1 %773  ;;  %v3620_v63 = vpop.permute.xlu2 %995 }
 0x3ab   :  { %741 = vmatpush.msrb.mxu2 %v680_v46  ;;  %v394_v23 = vpop.permute.xlu0 %393  ;;  %v795_v50 = vsel %vm787_vm14, %v786_v60, %v3609_v10 }
 0x3ac   :  { %v399_v30 = vsel %vm397_vm11, %v390_v47, %v394_v23  ;;  %v405_v42 = vsel %vm397_vm11, %v394_v23, %v382_v49  ;;  %v2983_v49 = vld [vmem:[%s4384_s1 + $0xc] sm:$0xf]  ;;  %v666_v47 = vperm.slane %v2977_v52, 0 }
 0x3ad   :  { %v420_v18 = vmul.f32 %v408_v15, %v405_v42  ;;  %v423_v26 = vmul.f32 %v411_v1, %v399_v30  ;;  %742 = vmatpush.msrb.mxu2 %v676_v16  ;;  %v802_v58 = vperm.slane %v2983_v49, 3  ;;  %v675_v15 = vmul.f32 %v667_v34, %v3474_v2 }
 0x3ae   :  { %v674_v52 = vmul.f32 %v666_v47, %v3447_v55  ;;  %v799_v16 = vperm.slane %v2983_v49, 0  ;;  %v800_v60 = vperm.slane %v2983_v49, 1  ;;  %v801_v23 = vperm.slane %v2983_v49, 2 }
 0x3af   :  { %572 = vmatpush.msra.mxu0 %v420_v18  ;;  %632 = vmatpush.msra.mxu3 %v423_v26  ;;  %v814_v51 = vmul.f32 %v802_v58, %v789_v48  ;;  %v810_v1 = vmul.f32 %v802_v58, %v3499_v13  ;;  %v3000_v48 = vld [vmem:[%s4384_s1 + $0x18] sm:$0xf] }
 0x3b0   :  { %v807_v55 = vmul.f32 %v799_v16, %v3503_v14  ;;  %v808_v14 = vmul.f32 %v800_v60, %v3466_v61  ;;  %v809_v57 = vmul.f32 %v801_v23, %v3484_v4 }
 0x3b1   :  { %573 = vmatpush.msra.mxu0 %v416_v3  ;;  %633 = vmatpush.msra.mxu3 %v419_v37 }
 0x3b2   :  { %2973 = vmatmul.msk.f32.vlgmr.msra.gmra.mxu0 %vm471_vm2, %v424_v44  ;;  %2976 = vmatmul.msk.f32.vlgmr.msra.gmra.mxu3 %vm471_vm2, %v424_v44  ;;  %v3633_v20 = vpop.permute.xlu1 %1003 }
 0x3b3   :  { %2981 = vmatmul.msk.f32.vlgmr.msrb.gmra.mxu2 %vm471_vm2, %v2978_v43  ;;  %761 = vmatpush.msrb.mxu3 %v681_v53  ;;  %v641_v56 = vpop.permute.xlu0 %640 }
 0x3b4   :  { %v660_v62 = vsel %vm654_vm13, %v641_v56, %v3578_v7  ;;  %v662_v0 = vsel %vm654_vm13, %v653_v54, %v641_v56  ;;  %v811_v7 = vmul.f32 %v799_v16, %v795_v50  ;;  %v3648_v54 = vpop.permute.xlu2 %1136 }
 0x3b5   :  { %v678_v46 = vmul.f32 %v666_v47, %v662_v0  ;;  %v679_v44 = vmul.f32 %v667_v34, %v660_v62  ;;  %762 = vmatpush.msrb.mxu3 %v677_v19 }
 0x3b7   :  { %894 = vmatpush.msra.mxu3 %v814_v51  ;;  %701 = vmatpush.msrb.mxu0 %v678_v46 }
 0x3b8   :  { %721 = vmatpush.msrb.mxu1 %v679_v44 }
 0x3b9   :  { %895 = vmatpush.msra.mxu3 %v810_v1  ;;  %702 = vmatpush.msrb.mxu0 %v674_v52 }
 0x3ba   :  { %722 = vmatpush.msrb.mxu1 %v675_v15  ;;  %2979 = vmatmul.msk.f32.vlgmr.msrb.gmra.mxu0 %vm471_vm2, %v2978_v43  ;;  %v1000_v13 = vpop.permute.xlu1 %999 }
 0x3bb   :  { %2980 = vmatmul.msk.f32.vlgmr.msrb.gmra.mxu1 %vm471_vm2, %v2978_v43  ;;  %2982 = vmatmul.msk.f32.vlgmr.msrb.gmra.mxu3 %vm471_vm2, %v2978_v43  ;;  %v778_v2 = vpop.permute.xlu0 %777  ;;  %v1013_v61 = vsel %vm1009_vm0, %v1000_v13, %v3633_v20 }
 0x3bc   :  { %834 = vmatpush.msra.mxu0 %v811_v7  ;;  %983 = vmatpush.msrb.mxu3 %v3374_v36  ;;  %v791_v30 = vsel %vm787_vm14, %v778_v2, %v3589_v24  ;;  %v793_v42 = vsel %vm787_vm14, %v3609_v10, %v778_v2  ;;  %v2984_v36 = vld [vmem:[%s4385_s5 + $0xc] sm:$0xf]  ;;  %v2994_v24 = vld [vmem:[%s4384_s1 + $0x14] sm:$0xf]  ;;  %v1133_v43 = vpop.permute.xlu2 %1132 }
 0x3bd   :  { %v812_v18 = vmul.f32 %v800_v60, %v793_v42  ;;  %v813_v26 = vmul.f32 %v801_v23, %v791_v30  ;;  %v1023_v10 = vperm.slane %v2994_v24, 2  ;;  %v1024_v37 = vperm.slane %v2994_v24, 3 }
 0x3be   :  { %835 = vmatpush.msra.mxu0 %v807_v55  ;;  %984 = vmatpush.msrb.mxu3 %v3302_v12  ;;  %v1015_v12 = vsel %vm1009_vm0, %v3620_v63, %v1000_v13  ;;  %v1022_v41 = vperm.slane %v2994_v24, 1 }
 0x3bf   :  { %854 = vmatpush.msra.mxu1 %v812_v18  ;;  %874 = vmatpush.msra.mxu2 %v813_v26  ;;  %v1032_v34 = vmul.f32 %v1024_v37, %v3520_v11  ;;  %v1154_v11 = vperm.slane %v3000_v48, 0 }
 0x3c0   :  { %923 = vmatpush.msrb.mxu0 %v3372_v35  ;;  %v1021_v35 = vperm.slane %v2994_v24, 0  ;;  %v1034_v19 = vmul.f32 %v1022_v41, %v1013_v61  ;;  %v3012_v24 = vld [vmem:[%s4384_s1 + $0x20] sm:$0xf] }
 0x3c1   :  { %855 = vmatpush.msra.mxu1 %v808_v14  ;;  %875 = vmatpush.msra.mxu2 %v809_v57  ;;  %v1162_v7 = vmul.f32 %v1154_v11, %v3552_v38  ;;  %v3001_v14 = vld [vmem:[%s4385_s5 + $0x18] sm:$0xf] }
 0x3c2   :  { %924 = vmatpush.msrb.mxu0 %v3300_v5  ;;  %v1141_v4 = vpop.permute.xlu1 %1140  ;;  %v1033_v3 = vmul.f32 %v1021_v35, %v1015_v12  ;;  %2987 = vmatmul.msk.f32.vlgmr.msra.gmra.mxu2 %vm471_vm2, %v2984_v36  ;;  %v1029_v58 = vmul.f32 %v1021_v35, %v3541_v32  ;;  %v1146_v32 = vsel %vm1142_vm15, %v1133_v43, %v3648_v54  ;;  %v1421_v12 = vperm.slane %v3012_v24, 1 }
 0x3c3   :  { %2985 = vmatmul.msk.f32.vlgmr.msra.gmra.mxu0 %vm471_vm2, %v2984_v36  ;;  %2986 = vmatmul.msk.f32.vlgmr.msra.gmra.mxu1 %vm471_vm2, %v2984_v36  ;;  %v1008_v5 = vpop.permute.xlu0 %1007  ;;  %v1144_v56 = vsel %vm1142_vm15, %v3648_v54, %v1141_v4 }
 0x3c4   :  { %2988 = vmatmul.msk.f32.vlgmr.msra.gmra.mxu3 %vm471_vm2, %v2984_v36  ;;  %943 = vmatpush.msrb.mxu1 %v3362_v31  ;;  %v1011_v49 = vsel %vm1009_vm0, %v3633_v20, %v1008_v5  ;;  %v1017_v53 = vsel %vm1009_vm0, %v1008_v5, %v3620_v63  ;;  %v1030_v20 = vmul.f32 %v1022_v41, %v3537_v25  ;;  %v1156_v63 = vperm.slane %v3000_v48, 2  ;;  %v1274_v52 = vpop.permute.xlu2 %1273 }
 0x3c5   :  { %963 = vmatpush.msrb.mxu2 %v3353_v29  ;;  %1056 = vmatpush.msra.mxu0 %v1033_v3  ;;  %v1035_v47 = vmul.f32 %v1023_v10, %v1011_v49  ;;  %v1036_v31 = vmul.f32 %v1024_v37, %v1017_v53  ;;  %v1031_v29 = vmul.f32 %v1023_v10, %v3516_v6  ;;  %v1157_v25 = vperm.slane %v3000_v48, 3  ;;  %v3007_v53 = vld [vmem:[%s4385_s5 + $0x1c] sm:$0xf] }
 0x3c6   :  { %944 = vmatpush.msrb.mxu1 %v3290_v21  ;;  %v2989_v21 = vld [vmem:[%s4385_s5 + $0x10] sm:$0xf]  ;;  %v1168_v62 = vmul.f32 %v1156_v63, %v1144_v56  ;;  %v1164_v46 = vmul.f32 %v1156_v63, %v3495_v9  ;;  %v3006_v9 = vld [vmem:[%s4384_s1 + $0x1c] sm:$0xf]  ;;  %v1420_v3 = vperm.slane %v3012_v24, 0 }
 0x3c7   :  { %964 = vmatpush.msrb.mxu2 %v3292_v22  ;;  %1057 = vmatpush.msra.mxu0 %v1029_v58  ;;  %v1155_v22 = vperm.slane %v3000_v48, 1  ;;  %v1165_v54 = vmul.f32 %v1157_v25, %v3556_v40  ;;  %v1290_v60 = vperm.slane %v3006_v9, 3  ;;  %v1289_v55 = vperm.slane %v3006_v9, 2 }
 0x3c8   :  { %1076 = vmatpush.msra.mxu1 %v1034_v19  ;;  %1116 = vmatpush.msra.mxu3 %v1036_v31  ;;  %v1288_v36 = vperm.slane %v3006_v9, 1  ;;  %v1422_v58 = vperm.slane %v3012_v24, 2 }
 0x3c9   :  { %1096 = vmatpush.msra.mxu2 %v1035_v47  ;;  %v1167_v51 = vmul.f32 %v1155_v22, %v1146_v32  ;;  %v1163_v50 = vmul.f32 %v1155_v22, %v3512_v17  ;;  %v2995_v17 = vld [vmem:[%s4385_s5 + $0x14] sm:$0xf]  ;;  %v1298_v30 = vmul.f32 %v1290_v60, %v3533_v28  ;;  %v1297_v18 = vmul.f32 %v1289_v55, %v3567_v59 }
 0x3ca   :  { %1077 = vmatpush.msra.mxu1 %v1030_v20  ;;  %1117 = vmatpush.msra.mxu3 %v1032_v34  ;;  %v3708_v6 = vpop.permute.xlu1 %1261  ;;  %v1287_v59 = vperm.slane %v3006_v9, 0  ;;  %v1296_v41 = vmul.f32 %v1288_v36, %v3571_v45  ;;  %v1409_v45 = vsel %vm1408_vm3, %v3546_v33, %v3580_v8 }
 0x3cb   :  { %1097 = vmatpush.msra.mxu2 %v1031_v29  ;;  %2990 = vmatmul.msk.f32.vlgmr.msrb.gmra.mxu0 %vm471_vm2, %v2989_v21  ;;  %v1129_v0 = vpop.permute.xlu0 %1128  ;;  %v1283_v13 = vsel %vm1275_vm1, %v1274_v52, %v3708_v6  ;;  %v1430_v32 = vmul.f32 %v1422_v58, %v1409_v45 }
 0x3cc   :  { %2991 = vmatmul.msk.f32.vlgmr.msrb.gmra.mxu1 %vm471_vm2, %v2989_v21  ;;  %2992 = vmatmul.msk.f32.vlgmr.msrb.gmra.mxu2 %vm471_vm2, %v2989_v21  ;;  %v1148_v44 = vsel %vm1142_vm15, %v1129_v0, %v1133_v43  ;;  %v1150_v1 = vsel %vm1142_vm15, %v1141_v4, %v1129_v0  ;;  %v1302_v2 = vmul.f32 %v1290_v60, %v1283_v13  ;;  %v1395_v26 = vpop.permute.xlu2 %1394 }
 0x3cd   :  { %2993 = vmatmul.msk.f32.vlgmr.msrb.gmra.mxu3 %vm471_vm2, %v2989_v21  ;;  %1209 = vmatpush.msrb.mxu1 %v1167_v51  ;;  %v1166_v15 = vmul.f32 %v1154_v11, %v1148_v44  ;;  %v1169_v16 = vmul.f32 %v1157_v25, %v1150_v1  ;;  %v1295_v43 = vmul.f32 %v1287_v59, %v3529_v27  ;;  %v1423_v27 = vperm.slane %v3012_v24, 3 }
 0x3ce   :  { %1229 = vmatpush.msrb.mxu2 %v1168_v62 }
 0x3cf   :  { %1210 = vmatpush.msrb.mxu1 %v1163_v50  ;;  %1189 = vmatpush.msrb.mxu0 %v1166_v15 }
 0x3d0   :  { %1230 = vmatpush.msrb.mxu2 %v1164_v46  ;;  %1249 = vmatpush.msrb.mxu3 %v1169_v16 }
 0x3d1   :  { %1190 = vmatpush.msrb.mxu0 %v1162_v7 }
 0x3d2   :  { %1250 = vmatpush.msrb.mxu3 %v1165_v54  ;;  %v1403_v23 = vpop.permute.xlu1 %1402 }
 0x3d3   :  { %2996 = vmatmul.msk.f32.vlgmr.msra.gmra.mxu0 %vm471_vm2, %v2995_v17  ;;  %v1270_v38 = vpop.permute.xlu0 %1269 }
 0x3d4   :  { %2997 = vmatmul.msk.f32.vlgmr.msra.gmra.mxu1 %vm471_vm2, %v2995_v17  ;;  %2998 = vmatmul.msk.f32.vlgmr.msra.gmra.mxu2 %vm471_vm2, %v2995_v17  ;;  %v1277_v40 = vsel %vm1275_vm1, %v1270_v38, %v1274_v52  ;;  %v1393_v48 = vpop.permute.xlu2 %1392 }
 0x3d5   :  { %2999 = vmatmul.msk.f32.vlgmr.msra.gmra.mxu3 %vm471_vm2, %v2995_v17  ;;  %v1301_v42 = vmul.f32 %v1289_v55, %v1277_v40  ;;  %v1415_v31 = vsel %vm1408_vm3, %v3580_v8, %v1393_v48  ;;  %v3013_v8 = vld [vmem:[%s4385_s5 + $0x20] sm:$0xf] }
 0x3d6   :  { %1382 = vmatpush.msra.mxu3 %v1302_v2  ;;  %v1431_v56 = vmul.f32 %v1423_v27, %v1415_v31 }
 0x3d7   :  { %1362 = vmatpush.msra.mxu2 %v1301_v42 }
 0x3d8   :  { %1383 = vmatpush.msra.mxu3 %v1298_v30 }
 0x3d9   :  { %1363 = vmatpush.msra.mxu2 %v1297_v18 }
 0x3da   :  { %v1399_v57 = vpop.permute.xlu1 %1398 }
 0x3db   :  { %3002 = vmatmul.msk.f32.vlgmr.msrb.gmra.mxu0 %vm471_vm2, %v3001_v14  ;;  %v1266_v28 = vpop.permute.xlu0 %1265  ;;  %v1412_v61 = vsel %vm1408_vm3, %v1399_v57, %v1403_v23  ;;  %v1414_v5 = vsel %vm1408_vm3, %v1395_v26, %v1399_v57 }
 0x3dc   :  { %3003 = vmatmul.msk.f32.vlgmr.msrb.gmra.mxu1 %vm471_vm2, %v3001_v14  ;;  %3004 = vmatmul.msk.f32.vlgmr.msrb.gmra.mxu2 %vm471_vm2, %v3001_v14  ;;  %v1279_v35 = vsel %vm1275_vm1, %v1266_v28, %v1270_v38  ;;  %v1281_v4 = vsel %vm1275_vm1, %v3708_v6, %v1266_v28  ;;  %v1433_v49 = vmul.f32 %v1421_v12, %v1412_v61 }
 0x3dd   :  { %3005 = vmatmul.msk.f32.vlgmr.msrb.gmra.mxu3 %vm471_vm2, %v3001_v14  ;;  %v1300_v10 = vmul.f32 %v1288_v36, %v1279_v35  ;;  %v1299_v37 = vmul.f32 %v1287_v59, %v1281_v4  ;;  %v1432_v19 = vmul.f32 %v1420_v3, %v1414_v5 }
 0x3df   :  { %1342 = vmatpush.msra.mxu1 %v1300_v10  ;;  %1322 = vmatpush.msra.mxu0 %v1299_v37 }
 0x3e1   :  { %1343 = vmatpush.msra.mxu1 %v1296_v41  ;;  %1323 = vmatpush.msra.mxu0 %v1295_v43 }
 0x3e3   :  { %1475 = vmatpush.msrb.mxu1 %v1433_v49  ;;  %3008 = vmatmul.msk.f32.vlgmr.msra.gmra.mxu0 %vm471_vm2, %v3007_v53  ;;  %v1407_v47 = vpop.permute.xlu0 %1406 }
 0x3e4   :  { %3009 = vmatmul.msk.f32.vlgmr.msra.gmra.mxu1 %vm471_vm2, %v3007_v53  ;;  %3010 = vmatmul.msk.f32.vlgmr.msra.gmra.mxu2 %vm471_vm2, %v3007_v53  ;;  %v1410_v29 = vsel %vm1408_vm3, %v1403_v23, %v1407_v47  ;;  %v1416_v20 = vsel %vm1408_vm3, %v1407_v47, %v1395_v26 }
 0x3e5   :  { %3011 = vmatmul.msk.f32.vlgmr.msra.gmra.mxu3 %vm471_vm2, %v3007_v53  ;;  %1455 = vmatpush.msrb.mxu0 %v1432_v19  ;;  %v1434_v63 = vmul.f32 %v1422_v58, %v1410_v29  ;;  %v1435_v34 = vmul.f32 %v1423_v27, %v1416_v20 }
 0x3e7   :  { %1495 = vmatpush.msrb.mxu2 %v1434_v63  ;;  %1515 = vmatpush.msrb.mxu3 %v1435_v34 }
 0x3e9   :  { %1496 = vmatpush.msrb.mxu2 %v1430_v32  ;;  %1516 = vmatpush.msrb.mxu3 %v1431_v56 }
 0x3eb   :  { %v1397_v21 = vpop.permute.xlu0 %1396 }
 0x3ec   :  { %3016 = vmatmul.msk.f32.vlgmr.msrb.gmra.mxu2 %vm471_vm2, %v3013_v8  ;;  %v1411_v22 = vsel %vm1408_vm3, %v1397_v21, %v3546_v33  ;;  %v1413_v6 = vsel %vm1408_vm3, %v1393_v48, %v1397_v21 }
 0x3ed   :  { %3017 = vmatmul.msk.f32.vlgmr.msrb.gmra.mxu3 %vm471_vm2, %v3013_v8  ;;  %v1428_v11 = vmul.f32 %v1420_v3, %v1413_v6  ;;  %v1429_v25 = vmul.f32 %v1421_v12, %v1411_v22 }
 0x3ef   :  { %1456 = vmatpush.msrb.mxu0 %v1428_v11  ;;  %1476 = vmatpush.msrb.mxu1 %v1429_v25 }
 0x3f0   :  { %3014 = vmatmul.msk.f32.vlgmr.msrb.gmra.mxu0 %vm471_vm2, %v3013_v8  ;;  %3015 = vmatmul.msk.f32.vlgmr.msrb.gmra.mxu1 %vm471_vm2, %v3013_v8 }
 0x406   :  { %v512_v51 = vpop.f32.mrf.mxu1 }
 0x414   :  { %v532_v0 = vpop.f32.mrf.mxu2 }
 0x416   :  { %v595_v44 = vpop.f32.mrf.mxu1 }
 0x417   :  { %v596_v36 = vadd.f32 %v595_v44, %v512_v51 }
 0x41f   :  { %v492_v62 = vpop.f32.mrf.mxu0 }
 0x425   :  { %v552_v46 = vpop.f32.mrf.mxu3 }
 0x42d   :  { %v615_v50 = vpop.f32.mrf.mxu2 }
 0x42e   :  { %v616_v28 = vadd.f32 %v615_v50, %v532_v0 }
 0x42f   :  { %v575_v1 = vpop.f32.mrf.mxu0 }
 0x430   :  { %v576_v24 = vadd.f32 %v575_v1, %v492_v62 }
 0x435   :  { %v635_v52 = vpop.f32.mrf.mxu3 }
 0x436   :  { %v744_v16 = vpop.f32.mrf.mxu2  ;;  %v636_v59 = vadd.f32 %v635_v52, %v552_v46 }
 0x437   :  { %v704_v33 = vpop.f32.mrf.mxu0  ;;  %v769_v61 = vadd.f32 %v744_v16, %v616_v28 }
 0x438   :  { %v724_v15 = vpop.f32.mrf.mxu1  ;;  %v767_v12 = vadd.f32 %v704_v33, %v576_v24 }
 0x439   :  { %v768_v35 = vadd.f32 %v724_v15, %v596_v36 }
 0x43e   :  { %v764_v9 = vpop.f32.mrf.mxu3 }
 0x43f   :  { %v770_v4 = vadd.f32 %v764_v9, %v636_v59 }
 0x440   :  { %v837_v7 = vpop.f32.mrf.mxu0  ;;  %v857_v54 = vpop.f32.mrf.mxu1 }
 0x441   :  { %v900_v10 = vadd.f32 %v837_v7, %v767_v12  ;;  %v901_v37 = vadd.f32 %v857_v54, %v768_v35 }
 0x445   :  { %v877_v13 = vpop.f32.mrf.mxu2 }
 0x446   :  { %v902_v43 = vadd.f32 %v877_v13, %v769_v61 }
 0x447   :  { %v897_v17 = vpop.f32.mrf.mxu3 }
 0x448   :  { %v926_v60 = vpop.f32.mrf.mxu0  ;;  %v903_v5 = vadd.f32 %v897_v17, %v770_v4  ;;  %v1545_v4 = vld [vmem:[%s4386_s6] sm:$0xff] }
 0x449   :  { %v946_v23 = vpop.f32.mrf.mxu1  ;;  %v989_v49 = vadd.f32 %v926_v60, %v900_v10 }
 0x44a   :  { %v990_v53 = vadd.f32 %v946_v23, %v901_v37 }
 0x44f   :  { %v966_v55 = vpop.f32.mrf.mxu2 }
 0x450   :  { %v986_v2 = vpop.f32.mrf.mxu3  ;;  %v1059_v38 = vpop.f32.mrf.mxu0  ;;  %v991_v45 = vadd.f32 %v966_v55, %v902_v43  ;;  %v3018_v43 = vld [vmem:[%s4386_s6 + $0x8] sm:$0xff] }
 0x451   :  { %v1079_v40 = vpop.f32.mrf.mxu1  ;;  %v992_v27 = vadd.f32 %v986_v2, %v903_v5  ;;  %v1122_v19 = vadd.f32 %v1059_v38, %v989_v49 }
 0x452   :  { %v1123_v47 = vadd.f32 %v1079_v40, %v990_v53 }
 0x457   :  { %v1099_v30 = vpop.f32.mrf.mxu2 }
 0x458   :  { %v1119_v42 = vpop.f32.mrf.mxu3  ;;  %v1192_v18 = vpop.f32.mrf.mxu0  ;;  %v1124_v31 = vadd.f32 %v1099_v30, %v991_v45 }
 0x459   :  { %v1212_v26 = vpop.f32.mrf.mxu1  ;;  %v1125_v29 = vadd.f32 %v1119_v42, %v992_v27  ;;  %v1255_v20 = vadd.f32 %v1192_v18, %v1122_v19 }
 0x45a   :  { %v1256_v63 = vadd.f32 %v1212_v26, %v1123_v47 }
 0x45f   :  { %v1232_v14 = vpop.f32.mrf.mxu2 }
 0x460   :  { %v1252_v57 = vpop.f32.mrf.mxu3  ;;  %v1325_v41 = vpop.f32.mrf.mxu0  ;;  %v1257_v34 = vadd.f32 %v1232_v14, %v1124_v31 }
 0x461   :  { %v1345_v3 = vpop.f32.mrf.mxu1  ;;  %v1258_v32 = vadd.f32 %v1252_v57, %v1125_v29  ;;  %v1388_v56 = vadd.f32 %v1325_v41, %v1255_v20 }
 0x462   :  { %v1389_v8 = vadd.f32 %v1345_v3, %v1256_v63 }
 0x467   :  { %v1365_v48 = vpop.f32.mrf.mxu2 }
 0x468   :  { %v1385_v58 = vpop.f32.mrf.mxu3  ;;  %v1390_v6 = vadd.f32 %v1365_v48, %v1257_v34 }
 0x469   :  { %v1391_v11 = vadd.f32 %v1385_v58, %v1258_v32 }
 0x46d   :  { %v1458_v21 = vpop.f32.mrf.mxu0  ;;  %v1478_v22 = vpop.f32.mrf.mxu1 }
 0x46e   :  { %v1521_v25 = vadd.f32 %v1458_v21, %v1388_v56  ;;  %v1522_v51 = vadd.f32 %v1478_v22, %v1389_v8  ;;  %v1607_v56 = vld [vmem:[%s4387_s8] sm:$0xff]  ;;  %v1608_v8 = vld [vmem:[%s4387_s8 + $0x8] sm:$0xff] }
 0x46f   :  { %v1498_v62 = vpop.f32.mrf.mxu2 }
 0x470   :  { %v1518_v0 = vpop.f32.mrf.mxu3  ;;  %v1529_v46 = vrot.slane %v1521_v25, 4  ;;  %v1530_v44 = vrot.slane %v1522_v51, 4  ;;  %v1523_v1 = vadd.f32 %v1498_v62, %v1390_v6 }
 0x471   :  { %v1524_v50 = vadd.f32 %v1518_v0, %v1391_v11 }
 0x472   :  { %1537 = vst [vmem:[%s4380_s10] sm:$0xf0] %v1529_v46  ;;  %v1531_v52 = vrot.slane %v1523_v1, 4 }
 0x473   :  { %v1532_v33 = vrot.slane %v1524_v50, 4  ;;  %1538 = vst [vmem:[%s4380_s10 + $0x8] sm:$0xf0] %v1530_v44 }
 0x474   :  { %1539 = vst [vmem:[%s4380_s10 + $0x10] sm:$0xf0] %v1531_v52 }
 0x475   :  { %1540 = vst [vmem:[%s4380_s10 + $0x18] sm:$0xf0] %v1532_v33 }
 0x479   :  { %v1541_v15 = vld [vmem:[%s4380_s10] sm:$0xff] }
 0x47a   :  { %v1542_v16 = vld [vmem:[%s4380_s10 + $0x8] sm:$0xff]  ;;  %v1558_v9 = vmul.f32 %v1541_v15, %v1541_v15 }
 0x47b   :  { %v1543_v7 = vld [vmem:[%s4380_s10 + $0x10] sm:$0xff]  ;;  %v1553_v54 = vadd.f32 %v1542_v16, %v1541_v15  ;;  %v1559_v13 = vmul.f32 %v1542_v16, %v1542_v16 }
 0x47c   :  { %v1544_v17 = vld [vmem:[%s4380_s10 + $0x18] sm:$0xff]  ;;  %v1560_v23 = vmul.f32 %v1543_v7, %v1543_v7 }
 0x47d   :  { %v1554_v60 = vadd.f32 %v1553_v54, %v1543_v7  ;;  %v1562_v55 = vadd.f32 %v1559_v13, %v1558_v9  ;;  %v1561_v38 = vmul.f32 %v1544_v17, %v1544_v17 }
 0x47f   :  { %v1555_v2 = vadd.f32 %v1554_v60, %v1544_v17  ;;  %v1563_v40 = vadd.f32 %v1562_v55, %v1560_v23 }
 0x481   :  { %1556 = vadd.xlane.f32.xlu2 %v1555_v2  ;;  %v1564_v30 = vadd.f32 %v1563_v40, %v1561_v38 }
 0x483   :  { %1565 = vadd.xlane.f32.xlu1 %v1564_v30 }
 0x4f4   :  { %v1557_v42 = vpop.xlane.xlu2 %1556 }
 0x4f5   :  { %v1567_v18 = vmul.f32 0.001953125, %v1557_v42 }
 0x4f6   :  { %v1566_v26 = vpop.xlane.xlu1 %1565 }
 0x4f7   :  { %v1569_v14 = vmul.f32 %v1567_v18, %v1567_v18  ;;  %v1568_v57 = vmul.f32 0.001953125, %v1566_v26 }
 0x4f9   :  { %v1570_v36 = vsub.f32 %v1568_v57, %v1569_v14 }
 0x4fb   :  { %v1571_v24 = vadd.f32 1.1e-05, %v1570_v36 }
 0x4fd   :  { %3099 = vrsqrt.f32 %v1571_v24  ;;  %vm1578_vm5 = vweird.f32 %v1571_v24 }
 0x503   :  { %v3100_v28 = vpop.eup %3099 }
 0x504   :  { %v1573_v59 = vmul.f32 %v3100_v28, %v1571_v24  ;;  %vm1579_vm4 = vweird.f32 %v3100_v28 }
 0x505   :  { %vm1580_vm6 = vmor %vm1578_vm5, %vm1579_vm4 }
 0x506   :  { %v1574_v12 = vmul.f32 %v3100_v28, %v1573_v59 }
 0x508   :  { %v1575_v35 = vmul.f32 0.5, %v1574_v12 }
 0x50a   :  { %v1576_v61 = vsub.f32 1.5, %v1575_v35 }
 0x50c   :  { %v1577_v10 = vmul.f32 %v3100_v28, %v1576_v61 }
 0x50e   :  { %v1581_v37 = vsel %vm1580_vm6, %v3100_v28, %v1577_v10 }
 0x50f   :  { %v1582_v41 = vmul.f32 %v1581_v37, %v1545_v4 }
 0x511   :  { %1587 = vperm.xlu0 %3091, %v1582_v41   ;;  %v1583_v3 = vmul.f32 %v1582_v41, %v1567_v18 }
 0x513   :  { %v1584_v5 = vsub.f32 %v3018_v43, %v1583_v3 }
 0x519   :  { %1596 = vperm.xlu0 %3091, %v1584_v5  }
 0x583   :  { %v1588_v49 = vpop.permute.xlu0 %1587 }
 0x584   :  { %v1590_v53 = vmul.f32 %v1588_v49, %v1541_v15  ;;  %v1591_v48 = vmul.f32 %v1588_v49, %v1542_v16  ;;  %v1592_v58 = vmul.f32 %v1588_v49, %v1543_v7  ;;  %v1593_v45 = vmul.f32 %v1588_v49, %v1544_v17 }
 0x58b   :  { %v1597_v27 = vpop.permute.xlu0 %1596 }
 0x58c   :  { %v1599_v19 = vadd.f32 %v1597_v27, %v1590_v53  ;;  %v1600_v47 = vadd.f32 %v1597_v27, %v1591_v48  ;;  %v1601_v31 = vadd.f32 %v1597_v27, %v1592_v58  ;;  %v1602_v29 = vadd.f32 %v1597_v27, %v1593_v45  ;;  %v1548_v27 = vld [vmem:[%s4388_s7] sm:$0xff] }
 0x58e   :  { %v1603_v20 = vmax.f32 %v1599_v19, 0.0  ;;  %v1604_v63 = vmax.f32 %v1600_v47, 0.0  ;;  %v1605_v34 = vmax.f32 %v1601_v31, 0.0  ;;  %v1606_v32 = vmax.f32 %v1602_v29, 0.0  ;;  %v1549_v29 = vld [vmem:[%s4388_s7 + $0x8] sm:$0xff] }
 0x590   :  { %1631 = vmatpush.msra.mxu0 %v1603_v20  ;;  %1654 = vmatpush.msra.mxu1 %v1604_v63  ;;  %v3019_v63 = vld [vmem:[%s4388_s7 + $0x10] sm:$0xff] }
 0x591   :  { %1677 = vmatpush.msra.mxu2 %v1605_v34  ;;  %1700 = vmatpush.msra.mxu3 %v1606_v32 }
 0x592   :  { %3025 = vmatmul.msk.f32.vlgmr.msra.gmra.mxu2 %vm1609_vm7, %v1607_v56  ;;  %3027 = vmatmul.msk.f32.vlgmr.msra.gmra.mxu3 %vm1609_vm7, %v1607_v56 }
 0x593   :  { %3021 = vmatmul.msk.f32.vlgmr.msra.gmra.mxu0 %vm1609_vm7, %v1607_v56  ;;  %3023 = vmatmul.msk.f32.vlgmr.msra.gmra.mxu1 %vm1609_vm7, %v1607_v56 }
 0x59a   :  { %3026 = vmatmul.msk.f32.gmra.mxu2 %vm1609_vm7, %v1608_v8  ;;  %3028 = vmatmul.msk.f32.gmra.mxu3 %vm1609_vm7, %v1608_v8 }
 0x59b   :  { %3022 = vmatmul.msk.f32.gmra.mxu0 %vm1609_vm7, %v1608_v8  ;;  %3024 = vmatmul.msk.f32.gmra.mxu1 %vm1609_vm7, %v1608_v8  ;;  %v3020_v8 = vld [vmem:[%s4388_s7 + $0x18] sm:$0xff] }
 0x610   :  { %v3827_v21 = vpop.f32.mrf.mxu0  ;;  %v3829_v22 = vpop.f32.mrf.mxu1 }
 0x611   :  { %v1708_v6 = vadd.f32 %v3829_v22, %v3827_v21  ;;  %v1718_v11 = vmul.f32 %v3827_v21, %v3827_v21  ;;  %v1719_v25 = vmul.f32 %v3829_v22, %v3829_v22 }
 0x613   :  { %v1726_v52 = vadd.f32 %v1719_v25, %v1718_v11 }
 0x615   :  { %v3837_v51 = vpop.f32.mrf.mxu2  ;;  %v3839_v62 = vpop.f32.mrf.mxu3 }
 0x616   :  { %v1709_v0 = vadd.f32 %v1708_v6, %v3837_v51  ;;  %v1720_v46 = vmul.f32 %v3837_v51, %v3837_v51  ;;  %v1721_v9 = vmul.f32 %v3839_v62, %v3839_v62 }
 0x618   :  { %v1710_v44 = vadd.f32 %v1709_v0, %v3839_v62  ;;  %v3845_v1 = vpop.f32.mrf.mxu0  ;;  %v3847_v50 = vpop.f32.mrf.mxu1  ;;  %v1727_v7 = vadd.f32 %v1726_v52, %v1720_v46 }
 0x619   :  { %v1722_v33 = vmul.f32 %v3845_v1, %v3845_v1  ;;  %v1723_v15 = vmul.f32 %v3847_v50, %v3847_v50  ;;  %v1713_v16 = vadd.f32 %v3847_v50, %v3845_v1 }
 0x61a   :  { %1711 = vadd.xlane.f32.xlu2 %v1710_v44  ;;  %v1728_v2 = vadd.f32 %v1727_v7, %v1721_v9 }
 0x61b   :  { %v1731_v54 = vadd.f32 %v1723_v15, %v1722_v33 }
 0x61d   :  { %v3857_v13 = vpop.f32.mrf.mxu2  ;;  %v3859_v17 = vpop.f32.mrf.mxu3 }
 0x61e   :  { %v1724_v60 = vmul.f32 %v3857_v13, %v3857_v13  ;;  %v1714_v23 = vadd.f32 %v1713_v16, %v3857_v13  ;;  %v1725_v55 = vmul.f32 %v3859_v17, %v3859_v17 }
 0x620   :  { %v1715_v38 = vadd.f32 %v1714_v23, %v3859_v17  ;;  %v1732_v40 = vadd.f32 %v1731_v54, %v1724_v60 }
 0x622   :  { %1729 = vadd.xlane.f32.xlu2 %v1728_v2  ;;  %1716 = vadd.xlane.f32.xlu0 %v1715_v38  ;;  %v1733_v30 = vadd.f32 %v1732_v40, %v1725_v55 }
 0x624   :  { %1734 = vadd.xlane.f32.xlu1 %v1733_v30 }
 0x68d   :  { %v1712_v42 = vpop.xlane.xlu2 %1711 }
 0x68e   :  { %v1736_v18 = vmul.f32 0.001953125, %v1712_v42 }
 0x690   :  { %v1740_v57 = vmul.f32 %v1736_v18, %v1736_v18 }
 0x695   :  { %v1730_v26 = vpop.xlane.xlu2 %1729  ;;  %v1717_v14 = vpop.xlane.xlu0 %1716 }
 0x696   :  { %v1738_v36 = vmul.f32 0.001953125, %v1730_v26  ;;  %v1737_v24 = vmul.f32 0.001953125, %v1717_v14 }
 0x697   :  { %v1735_v28 = vpop.xlane.xlu1 %1734 }
 0x698   :  { %v1742_v59 = vsub.f32 %v1738_v36, %v1740_v57  ;;  %v1741_v12 = vmul.f32 %v1737_v24, %v1737_v24  ;;  %v1739_v35 = vmul.f32 0.001953125, %v1735_v28 }
 0x69a   :  { %v1744_v61 = vadd.f32 1.1e-05, %v1742_v59  ;;  %v1743_v4 = vsub.f32 %v1739_v35, %v1741_v12 }
 0x69c   :  { %3101 = vrsqrt.f32 %v1744_v61  ;;  %v1745_v10 = vadd.f32 1.1e-05, %v1743_v4  ;;  %vm1752_vm4 = vweird.f32 %v1744_v61 }
 0x69e   :  { %3103 = vrsqrt.f32 %v1745_v10  ;;  %vm1762_vm9 = vweird.f32 %v1745_v10 }
 0x6a2   :  { %v3102_v37 = vpop.eup %3101 }
 0x6a3   :  { %v1747_v41 = vmul.f32 %v3102_v37, %v1744_v61  ;;  %vm1753_vm8 = vweird.f32 %v3102_v37 }
 0x6a4   :  { %v3104_v3 = vpop.eup %3103  ;;  %vm1754_vm5 = vmor %vm1752_vm4, %vm1753_vm8 }
 0x6a5   :  { %v1748_v43 = vmul.f32 %v3102_v37, %v1747_v41  ;;  %v1757_v5 = vmul.f32 %v3104_v3, %v1745_v10  ;;  %vm1763_vm10 = vweird.f32 %v3104_v3 }
 0x6a6   :  { %vm1764_vm6 = vmor %vm1762_vm9, %vm1763_vm10 }
 0x6a7   :  { %v1749_v49 = vmul.f32 0.5, %v1748_v43  ;;  %v1758_v53 = vmul.f32 %v3104_v3, %v1757_v5 }
 0x6a9   :  { %v1750_v48 = vsub.f32 1.5, %v1749_v49  ;;  %v1759_v58 = vmul.f32 0.5, %v1758_v53 }
 0x6ab   :  { %v1760_v45 = vsub.f32 1.5, %v1759_v58  ;;  %v1751_v19 = vmul.f32 %v3102_v37, %v1750_v48 }
 0x6ad   :  { %v1761_v47 = vmul.f32 %v3104_v3, %v1760_v45  ;;  %v1755_v31 = vsel %vm1754_vm5, %v3102_v37, %v1751_v19 }
 0x6ae   :  { %v1766_v20 = vmul.f32 %v1755_v31, %v1548_v27 }
 0x6af   :  { %v1765_v34 = vsel %vm1764_vm6, %v3104_v3, %v1761_v47 }
 0x6b0   :  { %1774 = vperm.xlu2 %3092, %v1766_v20   ;;  %v1768_v32 = vmul.f32 %v1766_v20, %v1736_v18  ;;  %v1767_v56 = vmul.f32 %v1765_v34, %v1549_v29 }
 0x6b2   :  { %v1770_v6 = vsub.f32 %v3019_v63, %v1768_v32  ;;  %v1769_v11 = vmul.f32 %v1767_v56, %v1737_v24 }
 0x6b4   :  { %1792 = vperm.xlu1 %3090, %v1770_v6   ;;  %v1771_v25 = vsub.f32 %v3020_v8, %v1769_v11 }
 0x6b6   :  { %1797 = vperm.xlu0 %3091, %v1771_v25  }
 0x6bc   :  { %1779 = vperm.xlu1 %3090, %v1767_v56  }
 0x70a   :  { %v1775_v0 = vpop.permute.xlu2 %1774 }
 0x70b   :  { %v1783_v46 = vmul.f32 %v1775_v0, %v3829_v22  ;;  %v1784_v44 = vmul.f32 %v1775_v0, %v3837_v51  ;;  %v1785_v52 = vmul.f32 %v1775_v0, %v3839_v62  ;;  %v1782_v22 = vmul.f32 %v1775_v0, %v3827_v21 }
 0x726   :  { %v1793_v33 = vpop.permute.xlu1 %1792 }
 0x727   :  { %v1801_v15 = vadd.f32 %v1793_v33, %v1783_v46  ;;  %v1802_v16 = vadd.f32 %v1793_v33, %v1784_v44  ;;  %v1803_v9 = vadd.f32 %v1793_v33, %v1785_v52  ;;  %v1800_v51 = vadd.f32 %v1793_v33, %v1782_v22 }
 0x728   :  { %v1798_v38 = vpop.permute.xlu0 %1797 }
 0x729   :  { %v3882_v7 = vmax.f32 %v1801_v15, 0.0  ;;  %v3884_v54 = vmax.f32 %v1802_v16, 0.0  ;;  %v3886_v60 = vmax.f32 %v1803_v9, 0.0  ;;  %v3895_v62 = vmax.f32 %v1800_v51, 0.0 }
 0x72b   :  { %1863 = vrot.lane.b32.xlu2 %v3882_v7, %s3108_s3  ;;  %1871 = vrot.lane.b32.xlu1 %v3886_v60, %s3108_s3 }
 0x72c   :  { %1867 = vrot.lane.b32.xlu0 %v3884_v54, %s3108_s3 }
 0x72e   :  { %v1780_v21 = vpop.permute.xlu1 %1779 }
 0x72f   :  { %v1787_v23 = vmul.f32 %v1780_v21, %v3847_v50  ;;  %v1789_v55 = vmul.f32 %v1780_v21, %v3859_v17  ;;  %v1788_v2 = vmul.f32 %v1780_v21, %v3857_v13  ;;  %v1786_v18 = vmul.f32 %v1780_v21, %v3845_v1 }
 0x731   :  { %v1805_v40 = vadd.f32 %v1798_v38, %v1787_v23  ;;  %v1807_v30 = vadd.f32 %v1798_v38, %v1789_v55  ;;  %v1806_v42 = vadd.f32 %v1798_v38, %v1788_v2  ;;  %v1804_v26 = vadd.f32 %v1798_v38, %v1786_v18 }
 0x733   :  { %1824 = vrot.lane.b32.xlu2 %v3884_v54, %s3107_s18  ;;  %1820 = vrot.lane.b32.xlu1 %v3882_v7, %s3107_s18  ;;  %v3955_v50 = vmax.f32 %v1805_v40, 0.0  ;;  %v3957_v17 = vmax.f32 %v1807_v30, 0.0  ;;  %v3959_v13 = vmax.f32 %v1806_v42, 0.0  ;;  %v3967_v14 = vmax.f32 %v1804_v26, 0.0  ;;  %v3029_v40 = vld [vmem:[%s4384_s1 + $0x4] sm:$0xf] }
 0x734   :  { %1859 = vrot.lane.b32.xlu0 %v3895_v62, %s3108_s3  ;;  %v1886_v30 = vperm.slane %v3029_v40, 1 }
 0x73b   :  { %1816 = vrot.lane.b32.xlu2 %v3895_v62, %s3107_s18  ;;  %2077 = vrot.lane.b32.xlu1 %v3884_v54, %s3109_s19 }
 0x73c   :  { %1828 = vrot.lane.b32.xlu0 %v3886_v60, %s3107_s18 }
 0x743   :  { %2081 = vrot.lane.b32.xlu2 %v3886_v60, %s3109_s19  ;;  %2069 = vrot.lane.b32.xlu1 %v3895_v62, %s3109_s19 }
 0x744   :  { %2073 = vrot.lane.b32.xlu0 %v3882_v7, %s3109_s19 }
 0x74b   :  { %2204 = vrot.lane.b32.xlu2 %v3882_v7, %s3110_s20  ;;  %2212 = vrot.lane.b32.xlu1 %v3886_v60, %s3110_s20 }
 0x74c   :  { %2208 = vrot.lane.b32.xlu0 %v3884_v54, %s3110_s20 }
 0x753   :  { %2428 = vrot.lane.b32.xlu2 %v3884_v54, %s3111_s21  ;;  %2420 = vrot.lane.b32.xlu1 %v3895_v62, %s3111_s21 }
 0x754   :  { %2200 = vrot.lane.b32.xlu0 %v3895_v62, %s3110_s20 }
 0x75b   :  { %2424 = vrot.lane.b32.xlu2 %v3882_v7, %s3111_s21  ;;  %2559 = vrot.lane.b32.xlu1 %v3884_v54, %s3112_s22 }
 0x75c   :  { %2432 = vrot.lane.b32.xlu0 %v3886_v60, %s3111_s21 }
 0x763   :  { %2563 = vrot.lane.b32.xlu2 %v3886_v60, %s3112_s22  ;;  %2555 = vrot.lane.b32.xlu1 %v3882_v7, %s3112_s22 }
 0x764   :  { %2551 = vrot.lane.b32.xlu0 %v3895_v62, %s3112_s22 }
 0x76b   :  { %2682 = vrot.lane.b32.xlu2 %v3895_v62, %s3113_s0  ;;  %2694 = vrot.lane.b32.xlu1 %v3886_v60, %s3113_s0 }
 0x76c   :  { %2690 = vrot.lane.b32.xlu0 %v3884_v54, %s3113_s0 }
 0x773   :  { %2821 = vrot.lane.b32.xlu2 %v3884_v54, %s3114_s23  ;;  %2813 = vrot.lane.b32.xlu1 %v3895_v62, %s3114_s23 }
 0x774   :  { %2686 = vrot.lane.b32.xlu0 %v3882_v7, %s3113_s0 }
 0x77b   :  { %1873 = vrot.lane.b32.xlu1 %v3957_v17, %s3108_s3  ;;  %1865 = vrot.lane.b32.xlu2 %v3955_v50, %s3108_s3 }
 0x77c   :  { %1869 = vrot.lane.b32.xlu0 %v3959_v13, %s3108_s3 }
 0x783   :  { %1826 = vrot.lane.b32.xlu1 %v3959_v13, %s3107_s18  ;;  %1861 = vrot.lane.b32.xlu2 %v3967_v14, %s3108_s3 }
 0x784   :  { %1822 = vrot.lane.b32.xlu0 %v3955_v50, %s3107_s18 }
 0x785   :  { %v3975_v1 = vpop.permute.xlu2 %1863 }
 0x78b   :  { %1818 = vrot.lane.b32.xlu1 %v3967_v14, %s3107_s18  ;;  %1830 = vrot.lane.b32.xlu2 %v3957_v17, %s3107_s18 }
 0x78c   :  { %2075 = vrot.lane.b32.xlu0 %v3955_v50, %s3109_s19 }
 0x78d   :  { %v1825_v57 = vpop.permute.xlu2 %1824 }
 0x793   :  { %2079 = vrot.lane.b32.xlu1 %v3959_v13, %s3109_s19  ;;  %2083 = vrot.lane.b32.xlu2 %v3957_v17, %s3109_s19 }
 0x794   :  { %2071 = vrot.lane.b32.xlu0 %v3967_v14, %s3109_s19 }
 0x795   :  { %v1817_v36 = vpop.permute.xlu2 %1816 }
 0x79b   :  { %2214 = vrot.lane.b32.xlu1 %v3957_v17, %s3110_s20  ;;  %2206 = vrot.lane.b32.xlu2 %v3955_v50, %s3110_s20 }
 0x79c   :  { %2210 = vrot.lane.b32.xlu0 %v3959_v13, %s3110_s20 }
 0x79d   :  { %v2082_v24 = vpop.permute.xlu2 %2081  ;;  %v1872_v28 = vpop.permute.xlu1 %1871 }
 0x79e   :  { %v1868_v59 = vpop.permute.xlu0 %1867 }
 0x79f   :  { %v3997_v12 = vsel %vm441_vm12, %v1868_v59, %v1872_v28  ;;  %v4002_v35 = vsel %vm441_vm12, %v3975_v1, %v1868_v59 }
 0x7a3   :  { %2422 = vrot.lane.b32.xlu1 %v3967_v14, %s3111_s21  ;;  %2202 = vrot.lane.b32.xlu2 %v3967_v14, %s3110_s20 }
 0x7a4   :  { %2434 = vrot.lane.b32.xlu0 %v3957_v17, %s3111_s21 }
 0x7a5   :  { %v2205_v61 = vpop.permute.xlu2 %2204  ;;  %v1821_v4 = vpop.permute.xlu1 %1820 }
 0x7a6   :  { %v4012_v10 = vsel %vm397_vm11, %v1821_v4, %v1825_v57  ;;  %v4016_v37 = vsel %vm397_vm11, %v1817_v36, %v1821_v4  ;;  %v1860_v41 = vpop.permute.xlu0 %1859 }
 0x7a7   :  { %v4020_v3 = vsel %vm441_vm12, %v1872_v28, %v1860_v41  ;;  %v1879_v26 = vsel %vm441_vm12, %v1860_v41, %v3975_v1  ;;  %v3030_v1 = vld [vmem:[%s4389_s9 + $0x4] sm:$0xf] }
 0x7ab   :  { %2426 = vrot.lane.b32.xlu1 %v3955_v50, %s3111_s21  ;;  %2430 = vrot.lane.b32.xlu2 %v3959_v13, %s3111_s21 }
 0x7ac   :  { %2553 = vrot.lane.b32.xlu0 %v3967_v14, %s3112_s22 }
 0x7ad   :  { %v2429_v43 = vpop.permute.xlu2 %2428  ;;  %v2078_v5 = vpop.permute.xlu1 %2077 }
 0x7ae   :  { %v4030_v49 = vsel %vm654_vm13, %v2078_v5, %v2082_v24  ;;  %v1829_v53 = vpop.permute.xlu0 %1828 }
 0x7af   :  { %v4034_v48 = vsel %vm397_vm11, %v1825_v57, %v1829_v53  ;;  %v4038_v58 = vsel %vm397_vm11, %v1829_v53, %v1817_v36 }
 0x7b3   :  { %2561 = vrot.lane.b32.xlu1 %v3959_v13, %s3112_s22  ;;  %2565 = vrot.lane.b32.xlu2 %v3957_v17, %s3112_s22 }
 0x7b4   :  { %2557 = vrot.lane.b32.xlu0 %v3955_v50, %s3112_s22 }
 0x7b5   :  { %v2425_v45 = vpop.permute.xlu2 %2424  ;;  %v2070_v27 = vpop.permute.xlu1 %2069 }
 0x7b6   :  { %v4048_v19 = vsel %vm1009_vm0, %v2425_v45, %v2429_v43  ;;  %v4052_v47 = vsel %vm654_vm13, %v2082_v24, %v2070_v27  ;;  %v2074_v31 = vpop.permute.xlu0 %2073 }
 0x7b7   :  { %v4056_v29 = vsel %vm654_vm13, %v2074_v31, %v2078_v5  ;;  %v4060_v20 = vsel %vm654_vm13, %v2070_v27, %v2074_v31 }
 0x7bb   :  { %2696 = vrot.lane.b32.xlu1 %v3957_v17, %s3113_s0  ;;  %2684 = vrot.lane.b32.xlu2 %v3967_v14, %s3113_s0 }
 0x7bc   :  { %2692 = vrot.lane.b32.xlu0 %v3959_v13, %s3113_s0 }
 0x7bd   :  { %v2564_v63 = vpop.permute.xlu2 %2563  ;;  %v2213_v34 = vpop.permute.xlu1 %2212 }
 0x7be   :  { %v2209_v32 = vpop.permute.xlu0 %2208 }
 0x7bf   :  { %v4070_v56 = vsel %vm787_vm14, %v2209_v32, %v2213_v34  ;;  %v4074_v8 = vsel %vm787_vm14, %v2205_v61, %v2209_v32 }
 0x7c3   :  { %2815 = vrot.lane.b32.xlu1 %v3967_v14, %s3114_s23  ;;  %2688 = vrot.lane.b32.xlu2 %v3955_v50, %s3113_s0 }
 0x7c4   :  { %2827 = vrot.lane.b32.xlu0 %v3957_v17, %s3114_s23 }
 0x7c5   :  { %v2683_v6 = vpop.permute.xlu2 %2682  ;;  %v2421_v11 = vpop.permute.xlu1 %2420 }
 0x7c6   :  { %v4084_v25 = vsel %vm1009_vm0, %v2421_v11, %v2425_v45  ;;  %v2201_v0 = vpop.permute.xlu0 %2200  ;;  %v1885_v45 = vperm.slane %v3029_v40, 0 }
 0x7c7   :  { %v4088_v46 = vsel %vm787_vm14, %v2201_v0, %v2205_v61  ;;  %v4092_v44 = vsel %vm787_vm14, %v2213_v34, %v2201_v0  ;;  %v1894_v61 = vmul.f32 %v1886_v30, %v1879_v26  ;;  %v1888_v34 = vperm.slane %v3029_v40, 3 }
 0x7cb   :  { %2819 = vrot.lane.b32.xlu1 %v3955_v50, %s3114_s23  ;;  %2823 = vrot.lane.b32.xlu2 %v3959_v13, %s3114_s23 }
 0x7cc   :  { %2825 = vrot.lane.b32.xlu0 %v3886_v60, %s3114_s23 }
 0x7cd   :  { %v4100_v52 = vpop.permute.xlu2 %2821  ;;  %v2560_v33 = vpop.permute.xlu1 %2559 }
 0x7ce   :  { %v4104_v15 = vsel %vm1142_vm15, %v2560_v33, %v2564_v63  ;;  %v2433_v16 = vpop.permute.xlu0 %2432 }
 0x7cf   :  { %v4108_v9 = vsel %vm1009_vm0, %v2429_v43, %v2433_v16  ;;  %v4112_v22 = vsel %vm1009_vm0, %v2433_v16, %v2421_v11 }
 0x7d3   :  { %2817 = vrot.lane.b32.xlu2 %v3882_v7, %s3114_s23 }
 0x7d5   :  { %v2556_v51 = vpop.permute.xlu1 %2555  ;;  %v1866_v21 = vpop.permute.xlu2 %1865 }
 0x7d6   :  { %v4118_v23 = vsel %vm1142_vm15, %v2556_v51, %v2560_v33  ;;  %v2552_v55 = vpop.permute.xlu0 %2551 }
 0x7d7   :  { %v4122_v2 = vsel %vm1142_vm15, %v2552_v55, %v2556_v51  ;;  %v4126_v38 = vsel %vm1142_vm15, %v2564_v63, %v2552_v55  ;;  %v1887_v63 = vperm.slane %v3029_v40, 2  ;;  %v1893_v55 = vmul.f32 %v1885_v45, %v4020_v3 }
 0x7d8   :  { %v1896_v40 = vmul.f32 %v1888_v34, %v3997_v12 }
 0x7dd   :  { %v2695_v42 = vpop.permute.xlu1 %2694  ;;  %v1862_v18 = vpop.permute.xlu2 %1861 }
 0x7de   :  { %v4136_v57 = vsel %vm1275_vm1, %v2695_v42, %v2683_v6  ;;  %v1880_v36 = vsel %vm441_vm12, %v1862_v18, %v1866_v21  ;;  %v2691_v24 = vpop.permute.xlu0 %2690 }
 0x7df   :  { %v1898_v28 = vmul.f32 %v1886_v30, %v1880_v36  ;;  %v4142_v59 = vsel %vm1275_vm1, %v2691_v24, %v2695_v42  ;;  %v1895_v30 = vmul.f32 %v1887_v63, %v4002_v35  ;;  %v1840_v42 = vld [vmem:[%s4384_s1] sm:$0xf] }
 0x7e0   :  { %v1844_v35 = vperm.slane %v1840_v42, 2 }
 0x7e1   :  { %1940 = vmatpush.msrb.mxu1 %v1898_v28 }
 0x7e3   :  { %1941 = vmatpush.msrb.mxu1 %v1894_v61 }
 0x7e4   :  { %3032 = vmatmul.msk.f32.vlgmr.msrb.gmra.mxu1 %vm471_vm2, %v3030_v1 }
 0x7e5   :  { %v4148_v4 = vpop.permute.xlu1 %2813  ;;  %v1831_v41 = vpop.permute.xlu2 %1830 }
 0x7e6   :  { %v2687_v43 = vpop.permute.xlu0 %2686 }
 0x7e7   :  { %v4152_v5 = vsel %vm1275_vm1, %v2687_v43, %v2691_v24  ;;  %v4156_v53 = vsel %vm1275_vm1, %v2683_v6, %v2687_v43  ;;  %v1852_v43 = vmul.f32 %v1844_v35, %v4012_v10 }
 0x7ed   :  { %v1874_v27 = vpop.permute.xlu1 %1873  ;;  %v4158_v31 = vpop.permute.xlu2 %2083 }
 0x7ee   :  { %v1882_v32 = vsel %vm441_vm12, %v1874_v27, %v1862_v18  ;;  %v1870_v11 = vpop.permute.xlu0 %1869  ;;  %v1845_v18 = vperm.slane %v1840_v42, 3 }
 0x7ef   :  { %v1897_v0 = vmul.f32 %v1885_v45, %v1882_v32  ;;  %v1876_v33 = vsel %vm441_vm12, %v1870_v11, %v1874_v27  ;;  %v1878_v16 = vsel %vm441_vm12, %v1866_v21, %v1870_v11  ;;  %v1858_v45 = vld [vmem:[%s4389_s9] sm:$0xf]  ;;  %v1843_v27 = vperm.slane %v1840_v42, 1 }
 0x7f0   :  { %v1899_v51 = vmul.f32 %v1887_v63, %v1878_v16  ;;  %v1900_v6 = vmul.f32 %v1888_v34, %v1876_v33  ;;  %v1853_v61 = vmul.f32 %v1845_v18, %v4034_v48  ;;  %v1842_v63 = vperm.slane %v1840_v42, 0 }
 0x7f1   :  { %1920 = vmatpush.msrb.mxu0 %v1897_v0  ;;  %v1851_v33 = vmul.f32 %v1843_v27, %v4016_v37 }
 0x7f2   :  { %1960 = vmatpush.msrb.mxu2 %v1899_v51  ;;  %1980 = vmatpush.msrb.mxu3 %v1900_v6  ;;  %v1850_v16 = vmul.f32 %v1842_v63, %v4038_v58  ;;  %v3039_v51 = vld [vmem:[%s4384_s1 + $0x8] sm:$0xf] }
 0x7f3   :  { %1921 = vmatpush.msrb.mxu0 %v1893_v55  ;;  %v2097_v6 = vperm.slane %v3039_v51, 2 }
 0x7f4   :  { %1961 = vmatpush.msrb.mxu2 %v1895_v30  ;;  %1981 = vmatpush.msrb.mxu3 %v1896_v40  ;;  %v2095_v30 = vperm.slane %v3039_v51, 0  ;;  %v2096_v40 = vperm.slane %v3039_v51, 1 }
 0x7f5   :  { %v1827_v21 = vpop.permute.xlu1 %1826  ;;  %v4172_v26 = vpop.permute.xlu2 %2206  ;;  %3031 = vmatmul.msk.f32.vlgmr.msrb.gmra.mxu0 %vm471_vm2, %v3030_v1  ;;  %3033 = vmatmul.msk.f32.vlgmr.msrb.gmra.mxu2 %vm471_vm2, %v3030_v1 }
 0x7f6   :  { %v1833_v12 = vsel %vm397_vm11, %v1827_v21, %v1831_v41  ;;  %v1823_v3 = vpop.permute.xlu0 %1822  ;;  %3034 = vmatmul.msk.f32.vlgmr.msrb.gmra.mxu3 %vm471_vm2, %v3030_v1 }
 0x7f7   :  { %v1857_v36 = vmul.f32 %v1845_v18, %v1833_v12  ;;  %v1835_v24 = vsel %vm397_vm11, %v1823_v3, %v1827_v21 }
 0x7f8   :  { %v1856_v28 = vmul.f32 %v1844_v35, %v1835_v24 }
 0x7f9   :  { %2063 = vmatpush.msra.mxu3 %v1857_v36 }
 0x7fa   :  { %2043 = vmatpush.msra.mxu2 %v1856_v28 }
 0x7fb   :  { %2064 = vmatpush.msra.mxu3 %v1853_v61  ;;  %v2105_v61 = vmul.f32 %v2097_v6, %v4056_v29 }
 0x7fc   :  { %2044 = vmatpush.msra.mxu2 %v1852_v43  ;;  %v2103_v43 = vmul.f32 %v2095_v30, %v4052_v47 }
 0x7fd   :  { %v1819_v1 = vpop.permute.xlu1 %1818  ;;  %v2203_v34 = vpop.permute.xlu2 %2202  ;;  %3037 = vmatmul.msk.f32.vlgmr.msra.gmra.mxu2 %vm471_vm2, %v1858_v45 }
 0x7fe   :  { %v1837_v32 = vsel %vm397_vm11, %v1819_v1, %v1823_v3  ;;  %v1839_v48 = vsel %vm397_vm11, %v1831_v41, %v1819_v1  ;;  %v2076_v10 = vpop.permute.xlu0 %2075  ;;  %3038 = vmatmul.msk.f32.vlgmr.msra.gmra.mxu3 %vm471_vm2, %v1858_v45  ;;  %v2098_v41 = vperm.slane %v3039_v51, 3 }
 0x7ff   :  { %v1854_v11 = vmul.f32 %v1842_v63, %v1839_v48  ;;  %v1855_v0 = vmul.f32 %v1843_v27, %v1837_v32  ;;  %v3045_v27 = vld [vmem:[%s4384_s1 + $0xc] sm:$0xf] }
 0x800   :  { %v2106_v28 = vmul.f32 %v2098_v41, %v4030_v49  ;;  %v3040_v49 = vld [vmem:[%s4389_s9 + $0x8] sm:$0xf]  ;;  %v2227_v29 = vperm.slane %v3045_v27, 1  ;;  %v2226_v47 = vperm.slane %v3045_v27, 0  ;;  %v2228_v1 = vperm.slane %v3045_v27, 2 }
 0x801   :  { %2003 = vmatpush.msra.mxu0 %v1854_v11  ;;  %2023 = vmatpush.msra.mxu1 %v1855_v0  ;;  %v2229_v32 = vperm.slane %v3045_v27, 3 }
 0x802   :  { %v2235_v11 = vmul.f32 %v2227_v29, %v4088_v46  ;;  %v3046_v46 = vld [vmem:[%s4389_s9 + $0xc] sm:$0xf] }
 0x803   :  { %2004 = vmatpush.msra.mxu0 %v1850_v16  ;;  %2024 = vmatpush.msra.mxu1 %v1851_v33 }
 0x804   :  { %3035 = vmatmul.msk.f32.vlgmr.msra.gmra.mxu0 %vm471_vm2, %v1858_v45  ;;  %3036 = vmatmul.msk.f32.vlgmr.msra.gmra.mxu1 %vm471_vm2, %v1858_v45  ;;  %v2104_v45 = vmul.f32 %v2096_v40, %v4060_v20 }
 0x805   :  { %v2080_v55 = vpop.permute.xlu1 %2079  ;;  %v4204_v35 = vpop.permute.xlu2 %2430 }
 0x806   :  { %v2086_v37 = vsel %vm654_vm13, %v2080_v55, %v4158_v31  ;;  %v2088_v58 = vsel %vm654_vm13, %v2076_v10, %v2080_v55  ;;  %v2072_v42 = vpop.permute.xlu0 %2071 }
 0x807   :  { %v2109_v18 = vmul.f32 %v2097_v6, %v2088_v58  ;;  %v2110_v21 = vmul.f32 %v2098_v41, %v2086_v37  ;;  %v2090_v12 = vsel %vm654_vm13, %v2072_v42, %v2076_v10  ;;  %v2092_v3 = vsel %vm654_vm13, %v4158_v31, %v2072_v42 }
 0x808   :  { %v2107_v36 = vmul.f32 %v2095_v30, %v2092_v3  ;;  %v2108_v24 = vmul.f32 %v2096_v40, %v2090_v12  ;;  %v2221_v31 = vsel %vm787_vm14, %v2203_v34, %v4172_v26  ;;  %v2234_v6 = vmul.f32 %v2226_v47, %v4092_v44  ;;  %v3056_v44 = vld [vmem:[%s4384_s1 + $0x14] sm:$0xf] }
 0x809   :  { %2170 = vmatpush.msrb.mxu2 %v2109_v18  ;;  %2190 = vmatpush.msrb.mxu3 %v2110_v21  ;;  %v2239_v20 = vmul.f32 %v2227_v29, %v2221_v31  ;;  %v2237_v30 = vmul.f32 %v2229_v32, %v4070_v56  ;;  %v2446_v21 = vperm.slane %v3056_v44, 0 }
 0x80a   :  { %2130 = vmatpush.msrb.mxu0 %v2107_v36  ;;  %2150 = vmatpush.msrb.mxu1 %v2108_v24 }
 0x80b   :  { %2171 = vmatpush.msrb.mxu2 %v2105_v61  ;;  %2191 = vmatpush.msrb.mxu3 %v2106_v28  ;;  %v2454_v28 = vmul.f32 %v2446_v21, %v4084_v25 }
 0x80c   :  { %2131 = vmatpush.msrb.mxu0 %v2103_v43  ;;  %2151 = vmatpush.msrb.mxu1 %v2104_v45  ;;  %v3057_v45 = vld [vmem:[%s4389_s9 + $0x14] sm:$0xf] }
 0x80d   :  { %3041 = vmatmul.msk.f32.vlgmr.msrb.gmra.mxu0 %vm471_vm2, %v3040_v49  ;;  %3042 = vmatmul.msk.f32.vlgmr.msrb.gmra.mxu1 %vm471_vm2, %v3040_v49  ;;  %v2215_v63 = vpop.permute.xlu1 %2214  ;;  %v4237_v55 = vpop.permute.xlu2 %2565 }
 0x80e   :  { %3043 = vmatmul.msk.f32.vlgmr.msrb.gmra.mxu2 %vm471_vm2, %v3040_v49  ;;  %3044 = vmatmul.msk.f32.vlgmr.msrb.gmra.mxu3 %vm471_vm2, %v3040_v49  ;;  %v2223_v48 = vsel %vm787_vm14, %v2215_v63, %v2203_v34  ;;  %v2211_v10 = vpop.permute.xlu0 %2210  ;;  %v2236_v34 = vmul.f32 %v2228_v1, %v4074_v8  ;;  %v2448_v8 = vperm.slane %v3056_v44, 2 }
 0x80f   :  { %2281 = vmatpush.msra.mxu1 %v2239_v20  ;;  %v2238_v0 = vmul.f32 %v2226_v47, %v2223_v48  ;;  %v2217_v33 = vsel %vm787_vm14, %v2211_v10, %v2215_v63  ;;  %v2219_v16 = vsel %vm787_vm14, %v4172_v26, %v2211_v10  ;;  %v2449_v26 = vperm.slane %v3056_v44, 3 }
 0x810   :  { %v2240_v51 = vmul.f32 %v2228_v1, %v2219_v16  ;;  %v2241_v41 = vmul.f32 %v2229_v32, %v2217_v33  ;;  %v3068_v1 = vld [vmem:[%s4384_s1 + $0x1c] sm:$0xf] }
 0x811   :  { %2282 = vmatpush.msra.mxu1 %v2235_v11  ;;  %2261 = vmatpush.msra.mxu0 %v2238_v0  ;;  %v2457_v42 = vmul.f32 %v2449_v26, %v4112_v22  ;;  %v2708_v0 = vperm.slane %v3068_v1, 0 }
 0x812   :  { %2301 = vmatpush.msra.mxu2 %v2240_v51  ;;  %2321 = vmatpush.msra.mxu3 %v2241_v41  ;;  %v3063_v41 = vld [vmem:[%s4389_s9 + $0x18] sm:$0xf] }
 0x813   :  { %2370 = vmatpush.msrb.mxu1 %v3955_v50  ;;  %2262 = vmatpush.msra.mxu0 %v2234_v6  ;;  %v2711_v6 = vperm.slane %v3068_v1, 3 }
 0x814   :  { %2302 = vmatpush.msra.mxu2 %v2236_v34  ;;  %2322 = vmatpush.msra.mxu3 %v2237_v30  ;;  %v2710_v34 = vperm.slane %v3068_v1, 2 }
 0x815   :  { %2371 = vmatpush.msrb.mxu1 %v3882_v7  ;;  %3047 = vmatmul.msk.f32.vlgmr.msra.gmra.mxu0 %vm471_vm2, %v3046_v46  ;;  %v2423_v50 = vpop.permute.xlu1 %2422  ;;  %v4266_v18 = vpop.permute.xlu2 %2684 }
 0x816   :  { %3048 = vmatmul.msk.f32.vlgmr.msra.gmra.mxu1 %vm471_vm2, %v3046_v46  ;;  %3049 = vmatmul.msk.f32.vlgmr.msra.gmra.mxu2 %vm471_vm2, %v3046_v46  ;;  %v2435_v56 = vpop.permute.xlu0 %2434 }
 0x817   :  { %3050 = vmatmul.msk.f32.vlgmr.msra.gmra.mxu3 %vm471_vm2, %v3046_v46  ;;  %2350 = vmatpush.msrb.mxu0 %v3967_v14  ;;  %v2437_v7 = vsel %vm1009_vm0, %v4204_v35, %v2435_v56  ;;  %v2443_v40 = vsel %vm1009_vm0, %v2435_v56, %v2423_v50  ;;  %v2456_v14 = vmul.f32 %v2448_v8, %v4108_v9  ;;  %v2709_v46 = vperm.slane %v3068_v1, 1 }
 0x818   :  { %2390 = vmatpush.msrb.mxu2 %v3959_v13  ;;  %2410 = vmatpush.msrb.mxu3 %v3957_v17  ;;  %v2460_v37 = vmul.f32 %v2448_v8, %v2437_v7  ;;  %v2461_v58 = vmul.f32 %v2449_v26, %v2443_v40  ;;  %v3051_v17 = vld [vmem:[%s4389_s9 + $0x10] sm:$0xf]  ;;  %v2447_v13 = vperm.slane %v3056_v44, 1  ;;  %v2719_v56 = vmul.f32 %v2711_v6, %v4136_v57 }
 0x819   :  { %2351 = vmatpush.msrb.mxu0 %v3895_v62  ;;  %v2718_v7 = vmul.f32 %v2710_v34, %v4142_v59  ;;  %v2717_v40 = vmul.f32 %v2709_v46, %v4152_v5 }
 0x81a   :  { %2391 = vmatpush.msrb.mxu2 %v3884_v54  ;;  %2411 = vmatpush.msrb.mxu3 %v3886_v60  ;;  %v3062_v54 = vld [vmem:[%s4384_s1 + $0x18] sm:$0xf] }
 0x81b   :  { %v2580_v12 = vperm.slane %v3062_v54, 3  ;;  %v2579_v27 = vperm.slane %v3062_v54, 2  ;;  %v2578_v29 = vperm.slane %v3062_v54, 1  ;;  %v2577_v25 = vperm.slane %v3062_v54, 0 }
 0x81c   :  { %2521 = vmatpush.msra.mxu2 %v2460_v37  ;;  %2541 = vmatpush.msra.mxu3 %v2461_v58  ;;  %v3074_v37 = vld [vmem:[%s4384_s1 + $0x20] sm:$0xf]  ;;  %v3069_v58 = vld [vmem:[%s4389_s9 + $0x1c] sm:$0xf] }
 0x81d   :  { %v2427_v62 = vpop.permute.xlu1 %2426  ;;  %3052 = vmatmul.msk.f32.vlgmr.msrb.gmra.mxu0 %vm471_vm2, %v3051_v17  ;;  %v2588_v43 = vmul.f32 %v2580_v12, %v4126_v38  ;;  %v2689_v31 = vpop.permute.xlu2 %2688  ;;  %v2587_v11 = vmul.f32 %v2579_v27, %v4104_v15  ;;  %v2586_v33 = vmul.f32 %v2578_v29, %v4118_v23  ;;  %v2585_v16 = vmul.f32 %v2577_v25, %v4122_v2 }
 0x81e   :  { %2522 = vmatpush.msra.mxu2 %v2456_v14  ;;  %2542 = vmatpush.msra.mxu3 %v2457_v42  ;;  %v2439_v60 = vsel %vm1009_vm0, %v2427_v62, %v4204_v35  ;;  %v2441_v9 = vsel %vm1009_vm0, %v2423_v50, %v2427_v62  ;;  %v2554_v22 = vpop.permute.xlu0 %2553  ;;  %v2455_v35 = vmul.f32 %v2447_v13, %v4048_v19  ;;  %v2841_v14 = vperm.slane %v3074_v37, 2 }
 0x81f   :  { %3053 = vmatmul.msk.f32.vlgmr.msrb.gmra.mxu1 %vm471_vm2, %v3051_v17  ;;  %3054 = vmatmul.msk.f32.vlgmr.msrb.gmra.mxu2 %vm471_vm2, %v3051_v17  ;;  %v2458_v3 = vmul.f32 %v2446_v21, %v2441_v9  ;;  %v2459_v36 = vmul.f32 %v2447_v13, %v2439_v60  ;;  %v2574_v24 = vsel %vm1142_vm15, %v4237_v55, %v2554_v22  ;;  %v2842_v42 = vperm.slane %v3074_v37, 3 }
 0x820   :  { %3055 = vmatmul.msk.f32.vlgmr.msrb.gmra.mxu3 %vm471_vm2, %v3051_v17  ;;  %v2592_v61 = vmul.f32 %v2580_v12, %v2574_v24  ;;  %v2703_v32 = vsel %vm1275_vm1, %v4266_v18, %v2689_v31  ;;  %v2716_v15 = vmul.f32 %v2708_v0, %v4156_v53  ;;  %v2839_v62 = vperm.slane %v3074_v37, 0 }
 0x821   :  { %2481 = vmatpush.msra.mxu0 %v2458_v3  ;;  %2501 = vmatpush.msra.mxu1 %v2459_v36  ;;  %v2720_v51 = vmul.f32 %v2708_v0, %v2703_v32  ;;  %v2840_v54 = vperm.slane %v3074_v37, 1 }
 0x822   :  { %2672 = vmatpush.msrb.mxu3 %v2592_v61 }
 0x823   :  { %2482 = vmatpush.msra.mxu0 %v2454_v28  ;;  %2502 = vmatpush.msra.mxu1 %v2455_v35 }
 0x824   :  { %2673 = vmatpush.msrb.mxu3 %v2588_v43 }
 0x825   :  { %v2562_v49 = vpop.permute.xlu1 %2561  ;;  %3058 = vmatmul.msk.f32.vlgmr.msra.gmra.mxu0 %vm471_vm2, %v3057_v45  ;;  %v2824_v50 = vpop.permute.xlu2 %2823 }
 0x826   :  { %v2568_v19 = vsel %vm1142_vm15, %v2562_v49, %v4237_v55  ;;  %v2558_v38 = vpop.permute.xlu0 %2557 }
 0x827   :  { %3059 = vmatmul.msk.f32.vlgmr.msra.gmra.mxu1 %vm471_vm2, %v3057_v45  ;;  %3060 = vmatmul.msk.f32.vlgmr.msra.gmra.mxu2 %vm471_vm2, %v3057_v45  ;;  %v2591_v47 = vmul.f32 %v2579_v27, %v2568_v19  ;;  %v2570_v20 = vsel %vm1142_vm15, %v2558_v38, %v2562_v49  ;;  %v2572_v63 = vsel %vm1142_vm15, %v2554_v22, %v2558_v38  ;;  %v3075_v27 = vld [vmem:[%s4389_s9 + $0x20] sm:$0xf] }
 0x828   :  { %3061 = vmatmul.msk.f32.vlgmr.msra.gmra.mxu3 %vm471_vm2, %v3057_v45  ;;  %v2589_v48 = vmul.f32 %v2577_v25, %v2572_v63  ;;  %v2590_v10 = vmul.f32 %v2578_v29, %v2570_v20 }
 0x829   :  { %2652 = vmatpush.msrb.mxu2 %v2591_v47 }
 0x82a   :  { %2612 = vmatpush.msrb.mxu0 %v2589_v48  ;;  %2632 = vmatpush.msrb.mxu1 %v2590_v10 }
 0x82b   :  { %2653 = vmatpush.msrb.mxu2 %v2587_v11 }
 0x82c   :  { %2613 = vmatpush.msrb.mxu0 %v2585_v16  ;;  %2633 = vmatpush.msrb.mxu1 %v2586_v33 }
 0x82d   :  { %v2697_v55 = vpop.permute.xlu1 %2696  ;;  %3064 = vmatmul.msk.f32.vlgmr.msrb.gmra.mxu0 %vm471_vm2, %v3063_v41  ;;  %v2818_v21 = vpop.permute.xlu2 %2817 }
 0x82e   :  { %2743 = vmatpush.msra.mxu0 %v2720_v51  ;;  %v2705_v23 = vsel %vm1275_vm1, %v2697_v55, %v4266_v18  ;;  %v2693_v2 = vpop.permute.xlu0 %2692  ;;  %v2831_v9 = vsel %vm1408_vm3, %v2818_v21, %v4100_v52  ;;  %v2833_v22 = vsel %vm1408_vm3, %v4148_v4, %v2818_v21 }
 0x82f   :  { %3065 = vmatmul.msk.f32.vlgmr.msrb.gmra.mxu1 %vm471_vm2, %v3063_v41  ;;  %3066 = vmatmul.msk.f32.vlgmr.msrb.gmra.mxu2 %vm471_vm2, %v3063_v41  ;;  %v2723_v30 = vmul.f32 %v2711_v6, %v2705_v23  ;;  %v2699_v44 = vsel %vm1275_vm1, %v2693_v2, %v2697_v55  ;;  %v2701_v53 = vsel %vm1275_vm1, %v2689_v31, %v2693_v2 }
 0x830   :  { %3067 = vmatmul.msk.f32.vlgmr.msrb.gmra.mxu3 %vm471_vm2, %v3063_v41  ;;  %2744 = vmatpush.msra.mxu0 %v2716_v15  ;;  %v2721_v8 = vmul.f32 %v2709_v46, %v2701_v53  ;;  %v2722_v26 = vmul.f32 %v2710_v34, %v2699_v44  ;;  %v2847_v31 = vmul.f32 %v2839_v62, %v2833_v22 }
 0x831   :  { %2803 = vmatpush.msra.mxu3 %v2723_v30  ;;  %v2848_v49 = vmul.f32 %v2840_v54, %v2831_v9 }
 0x832   :  { %2763 = vmatpush.msra.mxu1 %v2721_v8  ;;  %2783 = vmatpush.msra.mxu2 %v2722_v26 }
 0x833   :  { %2804 = vmatpush.msra.mxu3 %v2719_v56 }
 0x834   :  { %2764 = vmatpush.msra.mxu1 %v2717_v40  ;;  %2784 = vmatpush.msra.mxu2 %v2718_v7 }
 0x835   :  { %v2816_v57 = vpop.permute.xlu1 %2815  ;;  %3070 = vmatmul.msk.f32.vlgmr.msra.gmra.mxu0 %vm471_vm2, %v3069_v58 }
 0x836   :  { %v2828_v59 = vpop.permute.xlu0 %2827 }
 0x837   :  { %3071 = vmatmul.msk.f32.vlgmr.msra.gmra.mxu1 %vm471_vm2, %v3069_v58  ;;  %3072 = vmatmul.msk.f32.vlgmr.msra.gmra.mxu2 %vm471_vm2, %v3069_v58  ;;  %v2830_v5 = vsel %vm1408_vm3, %v2824_v50, %v2828_v59  ;;  %v2836_v18 = vsel %vm1408_vm3, %v2828_v59, %v2816_v57 }
 0x838   :  { %3073 = vmatmul.msk.f32.vlgmr.msra.gmra.mxu3 %vm471_vm2, %v3069_v58  ;;  %v2853_v17 = vmul.f32 %v2841_v14, %v2830_v5  ;;  %v2854_v13 = vmul.f32 %v2842_v42, %v2836_v18 }
 0x83a   :  { %2914 = vmatpush.msrb.mxu2 %v2853_v17  ;;  %2934 = vmatpush.msrb.mxu3 %v2854_v13 }
 0x83d   :  { %v2820_v60 = vpop.permute.xlu1 %2819 }
 0x83e   :  { %v2832_v12 = vsel %vm1408_vm3, %v2820_v60, %v2824_v50  ;;  %v2834_v3 = vsel %vm1408_vm3, %v2816_v57, %v2820_v60  ;;  %v2826_v36 = vpop.permute.xlu0 %2825 }
 0x83f   :  { %v2851_v24 = vmul.f32 %v2839_v62, %v2834_v3  ;;  %v2852_v28 = vmul.f32 %v2840_v54, %v2832_v12  ;;  %v2829_v61 = vsel %vm1408_vm3, %v4100_v52, %v2826_v36  ;;  %v2835_v35 = vsel %vm1408_vm3, %v2826_v36, %v4148_v4 }
 0x840   :  { %v2849_v43 = vmul.f32 %v2841_v14, %v2829_v61  ;;  %v2850_v45 = vmul.f32 %v2842_v42, %v2835_v35 }
 0x841   :  { %2874 = vmatpush.msrb.mxu0 %v2851_v24  ;;  %2894 = vmatpush.msrb.mxu1 %v2852_v28 }
 0x842   :  { %2915 = vmatpush.msrb.mxu2 %v2849_v43  ;;  %2935 = vmatpush.msrb.mxu3 %v2850_v45 }
 0x843   :  { %3078 = vmatmul.msk.f32.vlgmr.msrb.gmra.mxu2 %vm471_vm2, %v3075_v27  ;;  %3079 = vmatmul.msk.f32.vlgmr.msrb.gmra.mxu3 %vm471_vm2, %v3075_v27 }
 0x844   :  { %2875 = vmatpush.msrb.mxu0 %v2847_v31  ;;  %2895 = vmatpush.msrb.mxu1 %v2848_v49 }
 0x845   :  { %3076 = vmatmul.msk.f32.vlgmr.msrb.gmra.mxu0 %vm471_vm2, %v3075_v27  ;;  %3077 = vmatmul.msk.f32.vlgmr.msrb.gmra.mxu1 %vm471_vm2, %v3075_v27 }
 0x861   :  { %v1943_v52 = vpop.f32.mrf.mxu1 }
 0x872   :  { %v1923_v39 = vpop.f32.mrf.mxu0 }
 0x878   :  { %v1963_v4 = vpop.f32.mrf.mxu2 }
 0x879   :  { %v1983_v29 = vpop.f32.mrf.mxu3 }
 0x880   :  { %v2046_v38 = vpop.f32.mrf.mxu2 }
 0x881   :  { %v2006_v25 = vpop.f32.mrf.mxu0  ;;  %v2026_v19 = vpop.f32.mrf.mxu1  ;;  %v2047_v26 = vadd.f32 %v2046_v38, %v1963_v4 }
 0x882   :  { %v2066_v47 = vpop.f32.mrf.mxu3  ;;  %v2007_v44 = vadd.f32 %v2006_v25, %v1923_v39  ;;  %v2027_v53 = vadd.f32 %v2026_v19, %v1943_v52 }
 0x883   :  { %v2067_v56 = vadd.f32 %v2066_v47, %v1983_v29 }
 0x88a   :  { %v2133_v20 = vpop.f32.mrf.mxu0  ;;  %v2153_v63 = vpop.f32.mrf.mxu1 }
 0x88b   :  { %v2196_v50 = vadd.f32 %v2133_v20, %v2007_v44  ;;  %v2197_v8 = vadd.f32 %v2153_v63, %v2027_v53 }
 0x891   :  { %v2173_v1 = vpop.f32.mrf.mxu2  ;;  %v2193_v32 = vpop.f32.mrf.mxu3 }
 0x892   :  { %v2264_v48 = vpop.f32.mrf.mxu0  ;;  %v2198_v14 = vadd.f32 %v2173_v1, %v2047_v26  ;;  %v2199_v42 = vadd.f32 %v2193_v32, %v2067_v56 }
 0x893   :  { %v2284_v10 = vpop.f32.mrf.mxu1  ;;  %v2327_v7 = vadd.f32 %v2264_v48, %v2196_v50 }
 0x894   :  { %v2328_v40 = vadd.f32 %v2284_v10, %v2197_v8 }
 0x899   :  { %v2304_v11 = vpop.f32.mrf.mxu2 }
 0x89a   :  { %v2324_v0 = vpop.f32.mrf.mxu3  ;;  %v2353_v33 = vpop.f32.mrf.mxu0  ;;  %v2329_v5 = vadd.f32 %v2304_v11, %v2198_v14 }
 0x89b   :  { %v2416_v57 = vadd.f32 %v2353_v33, %v2327_v7  ;;  %v2330_v18 = vadd.f32 %v2324_v0, %v2199_v42 }
 0x89c   :  { %v2373_v16 = vpop.f32.mrf.mxu1 }
 0x89d   :  { %v2417_v59 = vadd.f32 %v2373_v16, %v2328_v40 }
 0x8a2   :  { %v2393_v51 = vpop.f32.mrf.mxu2  ;;  %v2484_v6 = vpop.f32.mrf.mxu0 }
 0x8a3   :  { %v2413_v41 = vpop.f32.mrf.mxu3  ;;  %v2547_v17 = vadd.f32 %v2484_v6, %v2416_v57  ;;  %v2418_v54 = vadd.f32 %v2393_v51, %v2329_v5 }
 0x8a4   :  { %v2504_v55 = vpop.f32.mrf.mxu1  ;;  %v2419_v60 = vadd.f32 %v2413_v41, %v2330_v18 }
 0x8a5   :  { %v2548_v13 = vadd.f32 %v2504_v55, %v2417_v59 }
 0x8aa   :  { %v2524_v15 = vpop.f32.mrf.mxu2  ;;  %v2615_v2 = vpop.f32.mrf.mxu0 }
 0x8ab   :  { %v2544_v23 = vpop.f32.mrf.mxu3  ;;  %v2678_v9 = vadd.f32 %v2615_v2, %v2547_v17  ;;  %v2549_v12 = vadd.f32 %v2524_v15, %v2418_v54 }
 0x8ac   :  { %v2635_v34 = vpop.f32.mrf.mxu1  ;;  %v2550_v3 = vadd.f32 %v2544_v23, %v2419_v60 }
 0x8ad   :  { %v2679_v22 = vadd.f32 %v2635_v34, %v2548_v13 }
 0x8b2   :  { %v2655_v46 = vpop.f32.mrf.mxu2  ;;  %v2746_v37 = vpop.f32.mrf.mxu0 }
 0x8b3   :  { %v2675_v30 = vpop.f32.mrf.mxu3  ;;  %v2809_v36 = vadd.f32 %v2746_v37, %v2678_v9  ;;  %v2680_v35 = vadd.f32 %v2655_v46, %v2549_v12 }
 0x8b4   :  { %v2766_v58 = vpop.f32.mrf.mxu1  ;;  %v2681_v43 = vadd.f32 %v2675_v30, %v2550_v3 }
 0x8b5   :  { %v2810_v24 = vadd.f32 %v2766_v58, %v2679_v22 }
 0x8ba   :  { %v2786_v21 = vpop.f32.mrf.mxu2 }
 0x8bb   :  { %v2806_v62 = vpop.f32.mrf.mxu3  ;;  %v2811_v31 = vadd.f32 %v2786_v21, %v2680_v35 }
 0x8bc   :  { %v2812_v49 = vadd.f32 %v2806_v62, %v2681_v43 }
 0x8c2   :  { %v2877_v28 = vpop.f32.mrf.mxu0  ;;  %v2897_v61 = vpop.f32.mrf.mxu1 }
 0x8c3   :  { %v2940_v45 = vadd.f32 %v2877_v28, %v2809_v36  ;;  %v2941_v27 = vadd.f32 %v2897_v61, %v2810_v24 }
 0x8c5   :  { %2944 = vst [vmem:[%s4380_s10 + $0x20] sm:$0xf] %v2940_v45 }
 0x8c6   :  { %2945 = vst [vmem:[%s4380_s10 + $0x28] sm:$0xf] %v2941_v27  ;;  %v2917_v39 = vpop.f32.mrf.mxu2  ;;  %v2937_v52 = vpop.f32.mrf.mxu3 }
 0x8c7   :  { %v2942_v4 = vadd.f32 %v2917_v39, %v2811_v31  ;;  %v2943_v29 = vadd.f32 %v2937_v52, %v2812_v49 }
 0x8c9   :  { %2946 = vst [vmem:[%s4380_s10 + $0x30] sm:$0xf] %v2942_v4 }
 0x8ca   :  { %2947 = vst [vmem:[%s4380_s10 + $0x38] sm:$0xf] %v2943_v29 }

</bundles_post_ra>
